<compile_context>
chip_gen: v6e
topology: v6e:2x2x1
jax: 0.10.0
libtpu: 0.0.40
codegen_flags: <defaults>
</compile_context>

<pallas_src>
import numpy as np
import jax
import jax.numpy as jnp
from jax.experimental import pallas as pl
from jax.experimental.pallas import tpu as pltpu


# ----------------------------------------------------------------------------
# Host-side construction of the banded conv matrices (done once at init).
# ----------------------------------------------------------------------------
def _bn_fold(gamma, beta, mean, var, eps=1e-5):
    scale = gamma / np.sqrt(var + eps)
    return scale.astype(np.float32), (beta - mean * scale).astype(np.float32)


def _banded_conv(w_oihw, scale, win, wout, stride, pad_out):
    """3x3 Conv2d (padding=1, no bias) as 3 per-ky matrices.

    Row layout of an activation tile:  lanes = (padded_col, channel).
    W[ky] has shape ((win+2)*cin, (wout+2*pad_out)*cout); the columns of the
    next layer's zero-pad positions are left as zeros.
    """
    cout, cin, _, _ = w_oihw.shape
    wp_in = win + 2
    wp_out = wout + 2 * pad_out
    mat = np.zeros((3, wp_in * cin, wp_out * cout), np.float32)
    for ky in range(3):
        for kx in range(3):
            blk = w_oihw[:, :, ky, kx].T * scale[None, :]          # (cin, cout)
            for xo in range(wout):
                xin_p = stride * xo + kx                           # padded in col
                mat[ky,
                    xin_p * cin:(xin_p + 1) * cin,
                    (pad_out + xo) * cout:(pad_out + xo + 1) * cout] += blk
    return mat


def _banded_convT(w_iohw, scale, win, pad_out):
    """ConvTranspose2d(k=3, stride=2, padding=1, output_padding=1, no bias).

    Even output columns <- (x=n, kx=1); odd <- (x=n, kx=2) + (x=n+1, kx=0).
    Row taps are applied in-kernel: even out rows use W[1], odd rows use
    W[2] (same input row) + W[0] (next input row; the bottom pad row of the
    input tile supplies the zero).
    """
    cin, cout, _, _ = w_iohw.shape
    wout = 2 * win
    wp_in = win + 2
    wp_out = wout + 2 * pad_out
    mat = np.zeros((3, wp_in * cin, wp_out * cout), np.float32)

    def add(ky, xin, kx, xout):
        blk = w_iohw[:, :, ky, kx] * scale[None, :]                # (cin, cout)
        xin_p = xin + 1
        mat[ky,
            xin_p * cin:(xin_p + 1) * cin,
            (pad_out + xout) * cout:(pad_out + xout + 1) * cout] += blk

    for ky in range(3):
        for n in range(win):
            add(ky, n, 1, 2 * n)            # even output columns
            add(ky, n, 2, 2 * n + 1)        # odd output columns (tap x=n)
            add(ky, n + 1, 0, 2 * n + 1)    # odd output columns (tap x=n+1)
    return mat


def _bias_row(bias, wout, pad_out):
    cout = bias.shape[0]
    row = np.zeros((wout + 2 * pad_out, cout), np.float32)
    row[pad_out:pad_out + wout, :] = bias[None, :]
    return row.reshape(1, -1)


def init_params(channels, spatial):
    """Deterministic synthetic parameters, pre-baked into banded form."""
    rng = np.random.default_rng(0)
    c, c2, c4 = channels, 2 * channels, 4 * channels
    h0, h1, h2 = spatial, spatial // 2, spatial // 4

    def conv_w(co, ci):
        return (0.05 * rng.standard_normal((co, ci, 3, 3))).astype(np.float32)

    def convT_w(ci, co):
        return (0.05 * rng.standard_normal((ci, co, 3, 3))).astype(np.float32)

    def bn(ch):
        gamma = (1.0 + 0.1 * rng.standard_normal(ch)).astype(np.float32)
        beta = (0.1 * rng.standard_normal(ch)).astype(np.float32)
        mean = (0.1 * rng.standard_normal(ch)).astype(np.float32)
        var = (1.0 + 0.1 * rng.random(ch)).astype(np.float32)
        return _bn_fold(gamma, beta, mean, var)

    ones = lambda ch: np.ones(ch, np.float32)
    s1, b1 = bn(c2)
    s3, b3 = bn(c2)
    s5, b5 = bn(c2)
    s6, b6 = bn(c)

    p = {
        'w1': _banded_conv(conv_w(c2, c), s1, h0, h1, 2, 1),   # conv1 + BN
        'b1': _bias_row(b1, h1, 1),
        'w2': _banded_conv(conv_w(c2, c2), ones(c2), h1, h1, 1, 1),  # conv2
        'w3': _banded_conv(conv_w(c2, c2), s3, h1, h2, 2, 1),  # conv3 + BN
        'b3': _bias_row(b3, h2, 1),
        'w4': _banded_conv(conv_w(c4, c2), ones(c4), h2, h2, 1, 1),  # conv4
        'w5': _banded_convT(convT_w(c4, c2), s5, h2, 1),       # conv5 + BN
        'b5': _bias_row(b5, h1, 1),
        'w6': _banded_convT(convT_w(c2, c), s6, h1, 0),        # conv6 + BN
        'b6': _bias_row(b6, h0, 0),
    }
    return {k: jnp.asarray(v) for k, v in p.items()}


# ----------------------------------------------------------------------------
# The single fused Pallas kernel (one grid step = one image).
# ----------------------------------------------------------------------------
def _hourglass_kernel(x_ref, em1_ref, em2_ref,
                      w1, b1, w2, w3, b3, w4, w5, b5, w6, b6,
                      out_ref,
                      a1, a2, a3, a4, a5):
    f32 = jnp.float32

    def mm(lhs, w_ref, tap):
        return jnp.dot(lhs, w_ref[tap], preferred_element_type=f32)

    # Zero the padded scratch tiles (their pad rows must read as zero).
    for r in (a1, a2, a3, a4, a5):
        r[...] = jnp.zeros_like(r)

    h1 = a1.shape[0] - 2          # 8
    h2 = a3.shape[0] - 2          # 4
    n_even0 = (x_ref.shape[0] + 1) // 2
    n_even2 = (a2.shape[0] + 1) // 2

    # conv1 (stride 2) + BN + ReLU.  x_ref rows are stored even-first, so
    # each vertical tap of the strided conv is a contiguous row block.
    acc = (mm(x_ref[0:h1, :], w1, 0)
           + mm(x_ref[n_even0:n_even0 + h1, :], w1, 1)
           + mm(x_ref[1:1 + h1, :], w1, 2))
    acc = jnp.maximum(acc + b1[...], 0.0)
    a1[1:1 + h1, :] = acc

    # conv2 (stride 1), then x = relu(x + em1).  Result is scattered into
    # a2's even-rows-first layout so conv3's strided taps become contiguous.
    acc = (mm(a1[0:h1, :], w2, 0)
           + mm(a1[1:1 + h1, :], w2, 1)
           + mm(a1[2:2 + h1, :], w2, 2))
    acc = jnp.maximum(acc + em1_ref[...], 0.0)
    for y in range(h1):
        r = y + 1                                   # padded row index
        pos = r // 2 if r % 2 == 0 else n_even2 + r // 2
        a2[pos:pos + 1, :] = acc[y:y + 1, :]

    # conv3 (stride 2) + BN + ReLU.
    acc = (mm(a2[0:h2, :], w3, 0)
           + mm(a2[n_even2:n_even2 + h2, :], w3, 1)
           + mm(a2[1:1 + h2, :], w3, 2))
    acc = jnp.maximum(acc + b3[...], 0.0)
    a3[1:1 + h2, :] = acc

    # conv4 (stride 1), then x' = relu(x' + em2).
    acc = (mm(a3[0:h2, :], w4, 0)
           + mm(a3[1:1 + h2, :], w4, 1)
           + mm(a3[2:2 + h2, :], w4, 2))
    acc = jnp.maximum(acc + em2_ref[...], 0.0)
    a4[1:1 + h2, :] = acc

    # conv5 (ConvTranspose, stride 2) + BN + ReLU.
    even = mm(a4[1:1 + h2, :], w5, 1)
    odd = mm(a4[1:1 + h2, :], w5, 2) + mm(a4[2:2 + h2, :], w5, 0)
    even = jnp.maximum(even + b5[...], 0.0)
    odd = jnp.maximum(odd + b5[...], 0.0)
    for m in range(h2):
        a5[1 + 2 * m:2 + 2 * m, :] = even[m:m + 1, :]
        a5[2 + 2 * m:3 + 2 * m, :] = odd[m:m + 1, :]

    # conv6 (ConvTranspose, stride 2) + BN (no ReLU).  Written as
    # [even output rows ; odd output rows]; the wrapper interleaves.
    even = mm(a5[1:1 + h1, :], w6, 1) + b6[...]
    odd = mm(a5[1:1 + h1, :], w6, 2) + mm(a5[2:2 + h1, :], w6, 0) + b6[...]
    out_ref[0:h1, :] = even
    out_ref[h1:2 * h1, :] = odd


# ----------------------------------------------------------------------------
# Forward pass (NCHW in / NCHW out, matching the PyTorch module).
# ----------------------------------------------------------------------------
def hourglass_2_forward(params, x_nchw, em1_nchw, em2_nchw):
    B, C, H, W = x_nchw.shape
    c2, c4 = 2 * C, 4 * C
    h0, h1, h2 = H, H // 2, H // 4
    L0 = (h0 + 2) * C            # input tile row length
    L1 = (h1 + 2) * c2           # conv1/conv2/conv5 tile row length
    L3 = (h2 + 2) * c2           # conv3 tile row length
    L4 = (h2 + 2) * c4           # conv4 tile row length
    Lout = h0 * C                # final (un-padded) row length

    # ---- tiny host-side layout prep (a few KB total) -----------------------
    xt = jnp.transpose(x_nchw, (0, 2, 3, 1))
    xt = jnp.pad(xt, ((0, 0), (1, 1), (1, 1), (0, 0)))
    xt = xt.reshape(B, h0 + 2, L0)
    x_rows = jnp.concatenate([xt[:, 0::2, :], xt[:, 1::2, :]], axis=1)  # even-first

    def em_rows(em, cw):
        t = jnp.transpose(em, (0, 2, 3, 1))
        t = jnp.pad(t, ((0, 0), (0, 0), (1, 1), (0, 0)))
        return t.reshape(em.shape[0], em.shape[2], (em.shape[3] + 2) * cw)

    em1_rows = em_rows(em1_nchw, c2)       # (B, h1, L1)
    em2_rows = em_rows(em2_nchw, c4)       # (B, h2, L4)

    # ---- specs --------------------------------------------------------------
    def full(shape):
        return pl.BlockSpec(shape, lambda i: (0,) * len(shape))

    def per_image(shape):
        return pl.BlockSpec((None,) + shape, lambda i: (i,) + (0,) * len(shape))

    mm_elems = 3 * (h1 * L0 * L1 + h1 * L1 * L1 + h2 * L1 * L3 +
                    h2 * L3 * L4 + h2 * L4 * L1 + h1 * L1 * Lout)
    flops = 2 * B * mm_elems
    bytes_accessed = 4 * (B * ((h0 + 2) * L0 + h1 * L1 + h2 * L4 + h0 * Lout)
                          + 3 * (L0 * L1 + L1 * L1 + L1 * L3 + L3 * L4
                                 + L4 * L1 + L1 * Lout)
                          + 2 * L1 + L3 + Lout)

    out = pl.pallas_call(
        _hourglass_kernel,
        out_shape=jax.ShapeDtypeStruct((B, h0, Lout), jnp.float32),
        grid=(B,),
        in_specs=[
            per_image((h0 + 2, L0)),          # x (even-first rows)
            per_image((h1, L1)),              # em1
            per_image((h2, L4)),              # em2
            full(params['w1'].shape), full(params['b1'].shape),
            full(params['w2'].shape),
            full(params['w3'].shape), full(params['b3'].shape),
            full(params['w4'].shape),
            full(params['w5'].shape), full(params['b5'].shape),
            full(params['w6'].shape), full(params['b6'].shape),
        ],
        out_specs=per_image((h0, Lout)),
        scratch_shapes=[
            pltpu.VMEM((h1 + 2, L1), jnp.float32),   # a1: conv1 out (padded)
            pltpu.VMEM((h1 + 2, L1), jnp.float32),   # a2: conv2 out (even-first)
            pltpu.VMEM((h2 + 2, L3), jnp.float32),   # a3: conv3 out
            pltpu.VMEM((h2 + 2, L4), jnp.float32),   # a4: conv4 out
            pltpu.VMEM((h1 + 2, L1), jnp.float32),   # a5: conv5 out
        ],
        compiler_params=pltpu.CompilerParams(
            dimension_semantics=("parallel",)),
        cost_estimate=pl.CostEstimate(flops=flops, transcendentals=0,
                                      bytes_accessed=bytes_accessed),
    )(x_rows, em1_rows, em2_rows,
      params['w1'], params['b1'], params['w2'],
      params['w3'], params['b3'], params['w4'],
      params['w5'], params['b5'], params['w6'], params['b6'])

    # Interleave the [even ; odd] output-row halves and convert back to NCHW.
    even, odd = out[:, 0:h1, :], out[:, h1:2 * h1, :]
    natural = jnp.stack([even, odd], axis=2).reshape(B, h0, Lout)
    nhwc = natural.reshape(B, h0, W, C)
    return jnp.transpose(nhwc, (0, 3, 1, 2))


if __name__ == "__main__":
    key = jax.random.PRNGKey(0)
    kx, ke1, ke2 = jax.random.split(key, 3)
    B, C, H, W = 2, 4, 16, 16
    x = jax.random.normal(kx, (B, C, H, W), jnp.float32)
    em1 = jax.random.normal(ke1, (B, 2 * C, H // 2, W // 2), jnp.float32)
    em2 = jax.random.normal(ke2, (B, 4 * C, H // 4, W // 4), jnp.float32)
    params = init_params(C, H)

    fwd = jax.jit(hourglass_2_forward)
    out = fwd(params, x, em1, em2)
    jax.block_until_ready(out)
    assert out.shape == (B, C, H, W), out.shape
    print("KERNEL_OK")
</pallas_src>

<mosaic_0001>
module attributes {stable_mosaic.version = 11 : i64} {
  func.func @_hourglass_kernel(%arg0: i32, %arg1: memref<1x18x72xf32, #tpu.memory_space<vmem>>, %arg2: memref<1x8x80xf32, #tpu.memory_space<vmem>>, %arg3: memref<1x4x96xf32, #tpu.memory_space<vmem>>, %arg4: memref<3x72x80xf32, #tpu.memory_space<vmem>>, %arg5: memref<1x80xf32, #tpu.memory_space<vmem>>, %arg6: memref<3x80x80xf32, #tpu.memory_space<vmem>>, %arg7: memref<3x80x48xf32, #tpu.memory_space<vmem>>, %arg8: memref<1x48xf32, #tpu.memory_space<vmem>>, %arg9: memref<3x48x96xf32, #tpu.memory_space<vmem>>, %arg10: memref<3x96x80xf32, #tpu.memory_space<vmem>>, %arg11: memref<1x80xf32, #tpu.memory_space<vmem>>, %arg12: memref<3x80x64xf32, #tpu.memory_space<vmem>>, %arg13: memref<1x64xf32, #tpu.memory_space<vmem>>, %arg14: memref<1x16x64xf32, #tpu.memory_space<vmem>>, %arg15: memref<10x80xf32, #tpu.memory_space<vmem>>, %arg16: memref<10x80xf32, #tpu.memory_space<vmem>>, %arg17: memref<6x48xf32, #tpu.memory_space<vmem>>, %arg18: memref<6x96xf32, #tpu.memory_space<vmem>>, %arg19: memref<10x80xf32, #tpu.memory_space<vmem>>) attributes {dimension_semantics = [#tpu.dimension_semantics<parallel>], iteration_bounds = array<i64: 2>, scalar_prefetch = 0 : i64, scratch_operands = 5 : i64, tpu.core_type = #tpu.core_type<tc>, window_params = [{transform_indices = @transform_0, window_bounds = array<i64: 1, 18, 72>}, {transform_indices = @transform_1, window_bounds = array<i64: 1, 8, 80>}, {transform_indices = @transform_2, window_bounds = array<i64: 1, 4, 96>}, {pipeline_mode = #tpu.pipeline_mode<synchronous>, transform_indices = @transform_3, window_bounds = array<i64: 3, 72, 80>}, {pipeline_mode = #tpu.pipeline_mode<synchronous>, transform_indices = @transform_4, window_bounds = array<i64: 1, 80>}, {pipeline_mode = #tpu.pipeline_mode<synchronous>, transform_indices = @transform_5, window_bounds = array<i64: 3, 80, 80>}, {pipeline_mode = #tpu.pipeline_mode<synchronous>, transform_indices = @transform_6, window_bounds = array<i64: 3, 80, 48>}, {pipeline_mode = #tpu.pipeline_mode<synchronous>, transform_indices = @transform_7, window_bounds = array<i64: 1, 48>}, {pipeline_mode = #tpu.pipeline_mode<synchronous>, transform_indices = @transform_8, window_bounds = array<i64: 3, 48, 96>}, {pipeline_mode = #tpu.pipeline_mode<synchronous>, transform_indices = @transform_9, window_bounds = array<i64: 3, 96, 80>}, {pipeline_mode = #tpu.pipeline_mode<synchronous>, transform_indices = @transform_10, window_bounds = array<i64: 1, 80>}, {pipeline_mode = #tpu.pipeline_mode<synchronous>, transform_indices = @transform_11, window_bounds = array<i64: 3, 80, 64>}, {pipeline_mode = #tpu.pipeline_mode<synchronous>, transform_indices = @transform_12, window_bounds = array<i64: 1, 64>}, {transform_indices = @transform_13, window_bounds = array<i64: 1, 16, 64>}]} {
    %cst = arith.constant 0.000000e+00 : f32
    %0 = vector.broadcast %cst : f32 to vector<10x80xf32>
    %c0 = arith.constant 0 : index
    %c0_0 = arith.constant 0 : index
    %1 = vector.load %arg15[%c0, %c0_0] : memref<10x80xf32, #tpu.memory_space<vmem>>, vector<10x80xf32>
    tpu.vector_store %arg15[%c0, %c0_0], %0 {strides = array<i32>} : memref<10x80xf32, #tpu.memory_space<vmem>>, vector<10x80xf32>,
    %cst_1 = arith.constant 0.000000e+00 : f32
    %2 = vector.broadcast %cst_1 : f32 to vector<10x80xf32>
    %c0_2 = arith.constant 0 : index
    %c0_3 = arith.constant 0 : index
    %3 = vector.load %arg16[%c0_2, %c0_3] : memref<10x80xf32, #tpu.memory_space<vmem>>, vector<10x80xf32>
    tpu.vector_store %arg16[%c0_2, %c0_3], %2 {strides = array<i32>} : memref<10x80xf32, #tpu.memory_space<vmem>>, vector<10x80xf32>,
    %cst_4 = arith.constant 0.000000e+00 : f32
    %4 = vector.broadcast %cst_4 : f32 to vector<6x48xf32>
    %c0_5 = arith.constant 0 : index
    %c0_6 = arith.constant 0 : index
    %5 = vector.load %arg17[%c0_5, %c0_6] : memref<6x48xf32, #tpu.memory_space<vmem>>, vector<6x48xf32>
    tpu.vector_store %arg17[%c0_5, %c0_6], %4 {strides = array<i32>} : memref<6x48xf32, #tpu.memory_space<vmem>>, vector<6x48xf32>,
    %cst_7 = arith.constant 0.000000e+00 : f32
    %6 = vector.broadcast %cst_7 : f32 to vector<6x96xf32>
    %c0_8 = arith.constant 0 : index
    %c0_9 = arith.constant 0 : index
    %7 = vector.load %arg18[%c0_8, %c0_9] : memref<6x96xf32, #tpu.memory_space<vmem>>, vector<6x96xf32>
    tpu.vector_store %arg18[%c0_8, %c0_9], %6 {strides = array<i32>} : memref<6x96xf32, #tpu.memory_space<vmem>>, vector<6x96xf32>,
    %cst_10 = arith.constant 0.000000e+00 : f32
    %8 = vector.broadcast %cst_10 : f32 to vector<10x80xf32>
    %c0_11 = arith.constant 0 : index
    %c0_12 = arith.constant 0 : index
    %9 = vector.load %arg19[%c0_11, %c0_12] : memref<10x80xf32, #tpu.memory_space<vmem>>, vector<10x80xf32>
    tpu.vector_store %arg19[%c0_11, %c0_12], %8 {strides = array<i32>} : memref<10x80xf32, #tpu.memory_space<vmem>>, vector<10x80xf32>,
    %c0_13 = arith.constant 0 : index
    %c0_14 = arith.constant 0 : index
    %c0_15 = arith.constant 0 : index
    %10 = vector.load %arg1[%c0_13, %c0_14, %c0_15] : memref<1x18x72xf32, #tpu.memory_space<vmem>>, vector<1x8x72xf32>
    %11 = vector.shape_cast %10 : vector<1x8x72xf32> to vector<8x72xf32>
    %c0_16 = arith.constant 0 : index
    %c0_17 = arith.constant 0 : index
    %c0_18 = arith.constant 0 : index
    %12 = vector.load %arg4[%c0_16, %c0_17, %c0_18] : memref<3x72x80xf32, #tpu.memory_space<vmem>>, vector<1x72x80xf32>
    %13 = vector.shape_cast %12 : vector<1x72x80xf32> to vector<72x80xf32>
    %cst_19 = arith.constant dense<0.000000e+00> : vector<8x80xf32>
    %14 = tpu.matmul %11, %13, %cst_19 {dimension_numbers = #tpu.dot_dimension_numbers<[1], [0], [0], [1], [0, 0, 1, 1], [], []>} : vector<8x72xf32>, vector<72x80xf32>, vector<8x80xf32> -> vector<8x80xf32>
    %c0_20 = arith.constant 0 : index
    %c9 = arith.constant 9 : index
    %c0_21 = arith.constant 0 : index
    %15 = vector.load %arg1[%c0_20, %c9, %c0_21] : memref<1x18x72xf32, #tpu.memory_space<vmem>>, vector<1x8x72xf32>
    %16 = vector.shape_cast %15 : vector<1x8x72xf32> to vector<8x72xf32>
    %c1 = arith.constant 1 : index
    %c0_22 = arith.constant 0 : index
    %c0_23 = arith.constant 0 : index
    %17 = vector.load %arg4[%c1, %c0_22, %c0_23] : memref<3x72x80xf32, #tpu.memory_space<vmem>>, vector<1x72x80xf32>
    %18 = vector.shape_cast %17 : vector<1x72x80xf32> to vector<72x80xf32>
    %cst_24 = arith.constant dense<0.000000e+00> : vector<8x80xf32>
    %19 = tpu.matmul %16, %18, %cst_24 {dimension_numbers = #tpu.dot_dimension_numbers<[1], [0], [0], [1], [0, 0, 1, 1], [], []>} : vector<8x72xf32>, vector<72x80xf32>, vector<8x80xf32> -> vector<8x80xf32>
    %20 = arith.addf %14, %19 : vector<8x80xf32>
    %c0_25 = arith.constant 0 : index
    %c1_26 = arith.constant 1 : index
    %c0_27 = arith.constant 0 : index
    %21 = vector.load %arg1[%c0_25, %c1_26, %c0_27] : memref<1x18x72xf32, #tpu.memory_space<vmem>>, vector<1x8x72xf32>
    %22 = vector.shape_cast %21 : vector<1x8x72xf32> to vector<8x72xf32>
    %c2 = arith.constant 2 : index
    %c0_28 = arith.constant 0 : index
    %c0_29 = arith.constant 0 : index
    %23 = vector.load %arg4[%c2, %c0_28, %c0_29] : memref<3x72x80xf32, #tpu.memory_space<vmem>>, vector<1x72x80xf32>
    %24 = vector.shape_cast %23 : vector<1x72x80xf32> to vector<72x80xf32>
    %cst_30 = arith.constant dense<0.000000e+00> : vector<8x80xf32>
    %25 = tpu.matmul %22, %24, %cst_30 {dimension_numbers = #tpu.dot_dimension_numbers<[1], [0], [0], [1], [0, 0, 1, 1], [], []>} : vector<8x72xf32>, vector<72x80xf32>, vector<8x80xf32> -> vector<8x80xf32>
    %26 = arith.addf %20, %25 : vector<8x80xf32>
    %c0_31 = arith.constant 0 : index
    %c0_32 = arith.constant 0 : index
    %27 = vector.load %arg5[%c0_31, %c0_32] : memref<1x80xf32, #tpu.memory_space<vmem>>, vector<1x80xf32>
    %28 = vector.broadcast %27 : vector<1x80xf32> to vector<8x80xf32>
    %29 = arith.addf %26, %28 : vector<8x80xf32>
    %cst_33 = arith.constant 0.000000e+00 : f32
    %30 = vector.broadcast %cst_33 : f32 to vector<8x80xf32>
    %31 = arith.maximumf %29, %30 : vector<8x80xf32>
    %c1_34 = arith.constant 1 : index
    %c0_35 = arith.constant 0 : index
    %32 = vector.load %arg15[%c1_34, %c0_35] : memref<10x80xf32, #tpu.memory_space<vmem>>, vector<8x80xf32>
    tpu.vector_store %arg15[%c1_34, %c0_35], %31 {strides = array<i32>} : memref<10x80xf32, #tpu.memory_space<vmem>>, vector<8x80xf32>,
    %c0_36 = arith.constant 0 : index
    %c0_37 = arith.constant 0 : index
    %33 = vector.load %arg15[%c0_36, %c0_37] : memref<10x80xf32, #tpu.memory_space<vmem>>, vector<8x80xf32>
    %c0_38 = arith.constant 0 : index
    %c0_39 = arith.constant 0 : index
    %c0_40 = arith.constant 0 : index
    %34 = vector.load %arg6[%c0_38, %c0_39, %c0_40] : memref<3x80x80xf32, #tpu.memory_space<vmem>>, vector<1x80x80xf32>
    %35 = vector.shape_cast %34 : vector<1x80x80xf32> to vector<80x80xf32>
    %cst_41 = arith.constant dense<0.000000e+00> : vector<8x80xf32>
    %36 = tpu.matmul %33, %35, %cst_41 {dimension_numbers = #tpu.dot_dimension_numbers<[1], [0], [0], [1], [0, 0, 1, 1], [], []>} : vector<8x80xf32>, vector<80x80xf32>, vector<8x80xf32> -> vector<8x80xf32>
    %c1_42 = arith.constant 1 : index
    %c0_43 = arith.constant 0 : index
    %37 = vector.load %arg15[%c1_42, %c0_43] : memref<10x80xf32, #tpu.memory_space<vmem>>, vector<8x80xf32>
    %c1_44 = arith.constant 1 : index
    %c0_45 = arith.constant 0 : index
    %c0_46 = arith.constant 0 : index
    %38 = vector.load %arg6[%c1_44, %c0_45, %c0_46] : memref<3x80x80xf32, #tpu.memory_space<vmem>>, vector<1x80x80xf32>
    %39 = vector.shape_cast %38 : vector<1x80x80xf32> to vector<80x80xf32>
    %cst_47 = arith.constant dense<0.000000e+00> : vector<8x80xf32>
    %40 = tpu.matmul %37, %39, %cst_47 {dimension_numbers = #tpu.dot_dimension_numbers<[1], [0], [0], [1], [0, 0, 1, 1], [], []>} : vector<8x80xf32>, vector<80x80xf32>, vector<8x80xf32> -> vector<8x80xf32>
    %41 = arith.addf %36, %40 : vector<8x80xf32>
    %c2_48 = arith.constant 2 : index
    %c0_49 = arith.constant 0 : index
    %42 = vector.load %arg15[%c2_48, %c0_49] : memref<10x80xf32, #tpu.memory_space<vmem>>, vector<8x80xf32>
    %c2_50 = arith.constant 2 : index
    %c0_51 = arith.constant 0 : index
    %c0_52 = arith.constant 0 : index
    %43 = vector.load %arg6[%c2_50, %c0_51, %c0_52] : memref<3x80x80xf32, #tpu.memory_space<vmem>>, vector<1x80x80xf32>
    %44 = vector.shape_cast %43 : vector<1x80x80xf32> to vector<80x80xf32>
    %cst_53 = arith.constant dense<0.000000e+00> : vector<8x80xf32>
    %45 = tpu.matmul %42, %44, %cst_53 {dimension_numbers = #tpu.dot_dimension_numbers<[1], [0], [0], [1], [0, 0, 1, 1], [], []>} : vector<8x80xf32>, vector<80x80xf32>, vector<8x80xf32> -> vector<8x80xf32>
    %46 = arith.addf %41, %45 : vector<8x80xf32>
    %c0_54 = arith.constant 0 : index
    %c0_55 = arith.constant 0 : index
    %c0_56 = arith.constant 0 : index
    %47 = vector.load %arg2[%c0_54, %c0_55, %c0_56] : memref<1x8x80xf32, #tpu.memory_space<vmem>>, vector<1x8x80xf32>
    %48 = vector.shape_cast %47 : vector<1x8x80xf32> to vector<8x80xf32>
    %49 = arith.addf %46, %48 : vector<8x80xf32>
    %cst_57 = arith.constant 0.000000e+00 : f32
    %50 = vector.broadcast %cst_57 : f32 to vector<8x80xf32>
    %51 = arith.maximumf %49, %50 : vector<8x80xf32>
    %52 = vector.extract_strided_slice %51 {offsets = [0, 0], sizes = [1, 80], strides = [1, 1]} : vector<8x80xf32> to vector<1x80xf32>
    %c5 = arith.constant 5 : index
    %c0_58 = arith.constant 0 : index
    %53 = vector.load %arg16[%c5, %c0_58] : memref<10x80xf32, #tpu.memory_space<vmem>>, vector<1x80xf32>
    tpu.vector_store %arg16[%c5, %c0_58], %52 {strides = array<i32>} : memref<10x80xf32, #tpu.memory_space<vmem>>, vector<1x80xf32>,
    %54 = vector.extract_strided_slice %51 {offsets = [1, 0], sizes = [1, 80], strides = [1, 1]} : vector<8x80xf32> to vector<1x80xf32>
    %c1_59 = arith.constant 1 : index
    %c0_60 = arith.constant 0 : index
    %55 = vector.load %arg16[%c1_59, %c0_60] : memref<10x80xf32, #tpu.memory_space<vmem>>, vector<1x80xf32>
    tpu.vector_store %arg16[%c1_59, %c0_60], %54 {strides = array<i32>} : memref<10x80xf32, #tpu.memory_space<vmem>>, vector<1x80xf32>,
    %56 = vector.extract_strided_slice %51 {offsets = [2, 0], sizes = [1, 80], strides = [1, 1]} : vector<8x80xf32> to vector<1x80xf32>
    %c6 = arith.constant 6 : index
    %c0_61 = arith.constant 0 : index
    %57 = vector.load %arg16[%c6, %c0_61] : memref<10x80xf32, #tpu.memory_space<vmem>>, vector<1x80xf32>
    tpu.vector_store %arg16[%c6, %c0_61], %56 {strides = array<i32>} : memref<10x80xf32, #tpu.memory_space<vmem>>, vector<1x80xf32>,
    %58 = vector.extract_strided_slice %51 {offsets = [3, 0], sizes = [1, 80], strides = [1, 1]} : vector<8x80xf32> to vector<1x80xf32>
    %c2_62 = arith.constant 2 : index
    %c0_63 = arith.constant 0 : index
    %59 = vector.load %arg16[%c2_62, %c0_63] : memref<10x80xf32, #tpu.memory_space<vmem>>, vector<1x80xf32>
    tpu.vector_store %arg16[%c2_62, %c0_63], %58 {strides = array<i32>} : memref<10x80xf32, #tpu.memory_space<vmem>>, vector<1x80xf32>,
    %60 = vector.extract_strided_slice %51 {offsets = [4, 0], sizes = [1, 80], strides = [1, 1]} : vector<8x80xf32> to vector<1x80xf32>
    %c7 = arith.constant 7 : index
    %c0_64 = arith.constant 0 : index
    %61 = vector.load %arg16[%c7, %c0_64] : memref<10x80xf32, #tpu.memory_space<vmem>>, vector<1x80xf32>
    tpu.vector_store %arg16[%c7, %c0_64], %60 {strides = array<i32>} : memref<10x80xf32, #tpu.memory_space<vmem>>, vector<1x80xf32>,
    %62 = vector.extract_strided_slice %51 {offsets = [5, 0], sizes = [1, 80], strides = [1, 1]} : vector<8x80xf32> to vector<1x80xf32>
    %c3 = arith.constant 3 : index
    %c0_65 = arith.constant 0 : index
    %63 = vector.load %arg16[%c3, %c0_65] : memref<10x80xf32, #tpu.memory_space<vmem>>, vector<1x80xf32>
    tpu.vector_store %arg16[%c3, %c0_65], %62 {strides = array<i32>} : memref<10x80xf32, #tpu.memory_space<vmem>>, vector<1x80xf32>,
    %64 = vector.extract_strided_slice %51 {offsets = [6, 0], sizes = [1, 80], strides = [1, 1]} : vector<8x80xf32> to vector<1x80xf32>
    %c8 = arith.constant 8 : index
    %c0_66 = arith.constant 0 : index
    %65 = vector.load %arg16[%c8, %c0_66] : memref<10x80xf32, #tpu.memory_space<vmem>>, vector<1x80xf32>
    tpu.vector_store %arg16[%c8, %c0_66], %64 {strides = array<i32>} : memref<10x80xf32, #tpu.memory_space<vmem>>, vector<1x80xf32>,
    %66 = vector.extract_strided_slice %51 {offsets = [7, 0], sizes = [1, 80], strides = [1, 1]} : vector<8x80xf32> to vector<1x80xf32>
    %c4 = arith.constant 4 : index
    %c0_67 = arith.constant 0 : index
    %67 = vector.load %arg16[%c4, %c0_67] : memref<10x80xf32, #tpu.memory_space<vmem>>, vector<1x80xf32>
    tpu.vector_store %arg16[%c4, %c0_67], %66 {strides = array<i32>} : memref<10x80xf32, #tpu.memory_space<vmem>>, vector<1x80xf32>,
    %c0_68 = arith.constant 0 : index
    %c0_69 = arith.constant 0 : index
    %68 = vector.load %arg16[%c0_68, %c0_69] : memref<10x80xf32, #tpu.memory_space<vmem>>, vector<4x80xf32>
    %c0_70 = arith.constant 0 : index
    %c0_71 = arith.constant 0 : index
    %c0_72 = arith.constant 0 : index
    %69 = vector.load %arg7[%c0_70, %c0_71, %c0_72] : memref<3x80x48xf32, #tpu.memory_space<vmem>>, vector<1x80x48xf32>
    %70 = vector.shape_cast %69 : vector<1x80x48xf32> to vector<80x48xf32>
    %cst_73 = arith.constant dense<0.000000e+00> : vector<4x48xf32>
    %71 = tpu.matmul %68, %70, %cst_73 {dimension_numbers = #tpu.dot_dimension_numbers<[1], [0], [0], [1], [0, 0, 1, 1], [], []>} : vector<4x80xf32>, vector<80x48xf32>, vector<4x48xf32> -> vector<4x48xf32>
    %c5_74 = arith.constant 5 : index
    %c0_75 = arith.constant 0 : index
    %72 = vector.load %arg16[%c5_74, %c0_75] : memref<10x80xf32, #tpu.memory_space<vmem>>, vector<4x80xf32>
    %c1_76 = arith.constant 1 : index
    %c0_77 = arith.constant 0 : index
    %c0_78 = arith.constant 0 : index
    %73 = vector.load %arg7[%c1_76, %c0_77, %c0_78] : memref<3x80x48xf32, #tpu.memory_space<vmem>>, vector<1x80x48xf32>
    %74 = vector.shape_cast %73 : vector<1x80x48xf32> to vector<80x48xf32>
    %cst_79 = arith.constant dense<0.000000e+00> : vector<4x48xf32>
    %75 = tpu.matmul %72, %74, %cst_79 {dimension_numbers = #tpu.dot_dimension_numbers<[1], [0], [0], [1], [0, 0, 1, 1], [], []>} : vector<4x80xf32>, vector<80x48xf32>, vector<4x48xf32> -> vector<4x48xf32>
    %76 = arith.addf %71, %75 : vector<4x48xf32>
    %c1_80 = arith.constant 1 : index
    %c0_81 = arith.constant 0 : index
    %77 = vector.load %arg16[%c1_80, %c0_81] : memref<10x80xf32, #tpu.memory_space<vmem>>, vector<4x80xf32>
    %c2_82 = arith.constant 2 : index
    %c0_83 = arith.constant 0 : index
    %c0_84 = arith.constant 0 : index
    %78 = vector.load %arg7[%c2_82, %c0_83, %c0_84] : memref<3x80x48xf32, #tpu.memory_space<vmem>>, vector<1x80x48xf32>
    %79 = vector.shape_cast %78 : vector<1x80x48xf32> to vector<80x48xf32>
    %cst_85 = arith.constant dense<0.000000e+00> : vector<4x48xf32>
    %80 = tpu.matmul %77, %79, %cst_85 {dimension_numbers = #tpu.dot_dimension_numbers<[1], [0], [0], [1], [0, 0, 1, 1], [], []>} : vector<4x80xf32>, vector<80x48xf32>, vector<4x48xf32> -> vector<4x48xf32>
    %81 = arith.addf %76, %80 : vector<4x48xf32>
    %c0_86 = arith.constant 0 : index
    %c0_87 = arith.constant 0 : index
    %82 = vector.load %arg8[%c0_86, %c0_87] : memref<1x48xf32, #tpu.memory_space<vmem>>, vector<1x48xf32>
    %83 = vector.broadcast %82 : vector<1x48xf32> to vector<4x48xf32>
    %84 = arith.addf %81, %83 : vector<4x48xf32>
    %cst_88 = arith.constant 0.000000e+00 : f32
    %85 = vector.broadcast %cst_88 : f32 to vector<4x48xf32>
    %86 = arith.maximumf %84, %85 : vector<4x48xf32>
    %c1_89 = arith.constant 1 : index
    %c0_90 = arith.constant 0 : index
    %87 = vector.load %arg17[%c1_89, %c0_90] : memref<6x48xf32, #tpu.memory_space<vmem>>, vector<4x48xf32>
    tpu.vector_store %arg17[%c1_89, %c0_90], %86 {strides = array<i32>} : memref<6x48xf32, #tpu.memory_space<vmem>>, vector<4x48xf32>,
    %c0_91 = arith.constant 0 : index
    %c0_92 = arith.constant 0 : index
    %88 = vector.load %arg17[%c0_91, %c0_92] : memref<6x48xf32, #tpu.memory_space<vmem>>, vector<4x48xf32>
    %c0_93 = arith.constant 0 : index
    %c0_94 = arith.constant 0 : index
    %c0_95 = arith.constant 0 : index
    %89 = vector.load %arg9[%c0_93, %c0_94, %c0_95] : memref<3x48x96xf32, #tpu.memory_space<vmem>>, vector<1x48x96xf32>
    %90 = vector.shape_cast %89 : vector<1x48x96xf32> to vector<48x96xf32>
    %cst_96 = arith.constant dense<0.000000e+00> : vector<4x96xf32>
    %91 = tpu.matmul %88, %90, %cst_96 {dimension_numbers = #tpu.dot_dimension_numbers<[1], [0], [0], [1], [0, 0, 1, 1], [], []>} : vector<4x48xf32>, vector<48x96xf32>, vector<4x96xf32> -> vector<4x96xf32>
    %c1_97 = arith.constant 1 : index
    %c0_98 = arith.constant 0 : index
    %92 = vector.load %arg17[%c1_97, %c0_98] : memref<6x48xf32, #tpu.memory_space<vmem>>, vector<4x48xf32>
    %c1_99 = arith.constant 1 : index
    %c0_100 = arith.constant 0 : index
    %c0_101 = arith.constant 0 : index
    %93 = vector.load %arg9[%c1_99, %c0_100, %c0_101] : memref<3x48x96xf32, #tpu.memory_space<vmem>>, vector<1x48x96xf32>
    %94 = vector.shape_cast %93 : vector<1x48x96xf32> to vector<48x96xf32>
    %cst_102 = arith.constant dense<0.000000e+00> : vector<4x96xf32>
    %95 = tpu.matmul %92, %94, %cst_102 {dimension_numbers = #tpu.dot_dimension_numbers<[1], [0], [0], [1], [0, 0, 1, 1], [], []>} : vector<4x48xf32>, vector<48x96xf32>, vector<4x96xf32> -> vector<4x96xf32>
    %96 = arith.addf %91, %95 : vector<4x96xf32>
    %c2_103 = arith.constant 2 : index
    %c0_104 = arith.constant 0 : index
    %97 = vector.load %arg17[%c2_103, %c0_104] : memref<6x48xf32, #tpu.memory_space<vmem>>, vector<4x48xf32>
    %c2_105 = arith.constant 2 : index
    %c0_106 = arith.constant 0 : index
    %c0_107 = arith.constant 0 : index
    %98 = vector.load %arg9[%c2_105, %c0_106, %c0_107] : memref<3x48x96xf32, #tpu.memory_space<vmem>>, vector<1x48x96xf32>
    %99 = vector.shape_cast %98 : vector<1x48x96xf32> to vector<48x96xf32>
    %cst_108 = arith.constant dense<0.000000e+00> : vector<4x96xf32>
    %100 = tpu.matmul %97, %99, %cst_108 {dimension_numbers = #tpu.dot_dimension_numbers<[1], [0], [0], [1], [0, 0, 1, 1], [], []>} : vector<4x48xf32>, vector<48x96xf32>, vector<4x96xf32> -> vector<4x96xf32>
    %101 = arith.addf %96, %100 : vector<4x96xf32>
    %c0_109 = arith.constant 0 : index
    %c0_110 = arith.constant 0 : index
    %c0_111 = arith.constant 0 : index
    %102 = vector.load %arg3[%c0_109, %c0_110, %c0_111] : memref<1x4x96xf32, #tpu.memory_space<vmem>>, vector<1x4x96xf32>
    %103 = vector.shape_cast %102 : vector<1x4x96xf32> to vector<4x96xf32>
    %104 = arith.addf %101, %103 : vector<4x96xf32>
    %cst_112 = arith.constant 0.000000e+00 : f32
    %105 = vector.broadcast %cst_112 : f32 to vector<4x96xf32>
    %106 = arith.maximumf %104, %105 : vector<4x96xf32>
    %c1_113 = arith.constant 1 : index
    %c0_114 = arith.constant 0 : index
    %107 = vector.load %arg18[%c1_113, %c0_114] : memref<6x96xf32, #tpu.memory_space<vmem>>, vector<4x96xf32>
    tpu.vector_store %arg18[%c1_113, %c0_114], %106 {strides = array<i32>} : memref<6x96xf32, #tpu.memory_space<vmem>>, vector<4x96xf32>,
    %c1_115 = arith.constant 1 : index
    %c0_116 = arith.constant 0 : index
    %108 = vector.load %arg18[%c1_115, %c0_116] : memref<6x96xf32, #tpu.memory_space<vmem>>, vector<4x96xf32>
    %c1_117 = arith.constant 1 : index
    %c0_118 = arith.constant 0 : index
    %c0_119 = arith.constant 0 : index
    %109 = vector.load %arg10[%c1_117, %c0_118, %c0_119] : memref<3x96x80xf32, #tpu.memory_space<vmem>>, vector<1x96x80xf32>
    %110 = vector.shape_cast %109 : vector<1x96x80xf32> to vector<96x80xf32>
    %cst_120 = arith.constant dense<0.000000e+00> : vector<4x80xf32>
    %111 = tpu.matmul %108, %110, %cst_120 {dimension_numbers = #tpu.dot_dimension_numbers<[1], [0], [0], [1], [0, 0, 1, 1], [], []>} : vector<4x96xf32>, vector<96x80xf32>, vector<4x80xf32> -> vector<4x80xf32>
    %c1_121 = arith.constant 1 : index
    %c0_122 = arith.constant 0 : index
    %112 = vector.load %arg18[%c1_121, %c0_122] : memref<6x96xf32, #tpu.memory_space<vmem>>, vector<4x96xf32>
    %c2_123 = arith.constant 2 : index
    %c0_124 = arith.constant 0 : index
    %c0_125 = arith.constant 0 : index
    %113 = vector.load %arg10[%c2_123, %c0_124, %c0_125] : memref<3x96x80xf32, #tpu.memory_space<vmem>>, vector<1x96x80xf32>
    %114 = vector.shape_cast %113 : vector<1x96x80xf32> to vector<96x80xf32>
    %cst_126 = arith.constant dense<0.000000e+00> : vector<4x80xf32>
    %115 = tpu.matmul %112, %114, %cst_126 {dimension_numbers = #tpu.dot_dimension_numbers<[1], [0], [0], [1], [0, 0, 1, 1], [], []>} : vector<4x96xf32>, vector<96x80xf32>, vector<4x80xf32> -> vector<4x80xf32>
    %c2_127 = arith.constant 2 : index
    %c0_128 = arith.constant 0 : index
    %116 = vector.load %arg18[%c2_127, %c0_128] : memref<6x96xf32, #tpu.memory_space<vmem>>, vector<4x96xf32>
    %c0_129 = arith.constant 0 : index
    %c0_130 = arith.constant 0 : index
    %c0_131 = arith.constant 0 : index
    %117 = vector.load %arg10[%c0_129, %c0_130, %c0_131] : memref<3x96x80xf32, #tpu.memory_space<vmem>>, vector<1x96x80xf32>
    %118 = vector.shape_cast %117 : vector<1x96x80xf32> to vector<96x80xf32>
    %cst_132 = arith.constant dense<0.000000e+00> : vector<4x80xf32>
    %119 = tpu.matmul %116, %118, %cst_132 {dimension_numbers = #tpu.dot_dimension_numbers<[1], [0], [0], [1], [0, 0, 1, 1], [], []>} : vector<4x96xf32>, vector<96x80xf32>, vector<4x80xf32> -> vector<4x80xf32>
    %120 = arith.addf %115, %119 : vector<4x80xf32>
    %c0_133 = arith.constant 0 : index
    %c0_134 = arith.constant 0 : index
    %121 = vector.load %arg11[%c0_133, %c0_134] : memref<1x80xf32, #tpu.memory_space<vmem>>, vector<1x80xf32>
    %122 = vector.broadcast %121 : vector<1x80xf32> to vector<4x80xf32>
    %123 = arith.addf %111, %122 : vector<4x80xf32>
    %cst_135 = arith.constant 0.000000e+00 : f32
    %124 = vector.broadcast %cst_135 : f32 to vector<4x80xf32>
    %125 = arith.maximumf %123, %124 : vector<4x80xf32>
    %c0_136 = arith.constant 0 : index
    %c0_137 = arith.constant 0 : index
    %126 = vector.load %arg11[%c0_136, %c0_137] : memref<1x80xf32, #tpu.memory_space<vmem>>, vector<1x80xf32>
    %127 = vector.broadcast %126 : vector<1x80xf32> to vector<4x80xf32>
    %128 = arith.addf %120, %127 : vector<4x80xf32>
    %cst_138 = arith.constant 0.000000e+00 : f32
    %129 = vector.broadcast %cst_138 : f32 to vector<4x80xf32>
    %130 = arith.maximumf %128, %129 : vector<4x80xf32>
    %131 = vector.extract_strided_slice %125 {offsets = [0, 0], sizes = [1, 80], strides = [1, 1]} : vector<4x80xf32> to vector<1x80xf32>
    %c1_139 = arith.constant 1 : index
    %c0_140 = arith.constant 0 : index
    %132 = vector.load %arg19[%c1_139, %c0_140] : memref<10x80xf32, #tpu.memory_space<vmem>>, vector<1x80xf32>
    tpu.vector_store %arg19[%c1_139, %c0_140], %131 {strides = array<i32>} : memref<10x80xf32, #tpu.memory_space<vmem>>, vector<1x80xf32>,
    %133 = vector.extract_strided_slice %130 {offsets = [0, 0], sizes = [1, 80], strides = [1, 1]} : vector<4x80xf32> to vector<1x80xf32>
    %c2_141 = arith.constant 2 : index
    %c0_142 = arith.constant 0 : index
    %134 = vector.load %arg19[%c2_141, %c0_142] : memref<10x80xf32, #tpu.memory_space<vmem>>, vector<1x80xf32>
    tpu.vector_store %arg19[%c2_141, %c0_142], %133 {strides = array<i32>} : memref<10x80xf32, #tpu.memory_space<vmem>>, vector<1x80xf32>,
    %135 = vector.extract_strided_slice %125 {offsets = [1, 0], sizes = [1, 80], strides = [1, 1]} : vector<4x80xf32> to vector<1x80xf32>
    %c3_143 = arith.constant 3 : index
    %c0_144 = arith.constant 0 : index
    %136 = vector.load %arg19[%c3_143, %c0_144] : memref<10x80xf32, #tpu.memory_space<vmem>>, vector<1x80xf32>
    tpu.vector_store %arg19[%c3_143, %c0_144], %135 {strides = array<i32>} : memref<10x80xf32, #tpu.memory_space<vmem>>, vector<1x80xf32>,
    %137 = vector.extract_strided_slice %130 {offsets = [1, 0], sizes = [1, 80], strides = [1, 1]} : vector<4x80xf32> to vector<1x80xf32>
    %c4_145 = arith.constant 4 : index
    %c0_146 = arith.constant 0 : index
    %138 = vector.load %arg19[%c4_145, %c0_146] : memref<10x80xf32, #tpu.memory_space<vmem>>, vector<1x80xf32>
    tpu.vector_store %arg19[%c4_145, %c0_146], %137 {strides = array<i32>} : memref<10x80xf32, #tpu.memory_space<vmem>>, vector<1x80xf32>,
    %139 = vector.extract_strided_slice %125 {offsets = [2, 0], sizes = [1, 80], strides = [1, 1]} : vector<4x80xf32> to vector<1x80xf32>
    %c5_147 = arith.constant 5 : index
    %c0_148 = arith.constant 0 : index
    %140 = vector.load %arg19[%c5_147, %c0_148] : memref<10x80xf32, #tpu.memory_space<vmem>>, vector<1x80xf32>
    tpu.vector_store %arg19[%c5_147, %c0_148], %139 {strides = array<i32>} : memref<10x80xf32, #tpu.memory_space<vmem>>, vector<1x80xf32>,
    %141 = vector.extract_strided_slice %130 {offsets = [2, 0], sizes = [1, 80], strides = [1, 1]} : vector<4x80xf32> to vector<1x80xf32>
    %c6_149 = arith.constant 6 : index
    %c0_150 = arith.constant 0 : index
    %142 = vector.load %arg19[%c6_149, %c0_150] : memref<10x80xf32, #tpu.memory_space<vmem>>, vector<1x80xf32>
    tpu.vector_store %arg19[%c6_149, %c0_150], %141 {strides = array<i32>} : memref<10x80xf32, #tpu.memory_space<vmem>>, vector<1x80xf32>,
    %143 = vector.extract_strided_slice %125 {offsets = [3, 0], sizes = [1, 80], strides = [1, 1]} : vector<4x80xf32> to vector<1x80xf32>
    %c7_151 = arith.constant 7 : index
    %c0_152 = arith.constant 0 : index
    %144 = vector.load %arg19[%c7_151, %c0_152] : memref<10x80xf32, #tpu.memory_space<vmem>>, vector<1x80xf32>
    tpu.vector_store %arg19[%c7_151, %c0_152], %143 {strides = array<i32>} : memref<10x80xf32, #tpu.memory_space<vmem>>, vector<1x80xf32>,
    %145 = vector.extract_strided_slice %130 {offsets = [3, 0], sizes = [1, 80], strides = [1, 1]} : vector<4x80xf32> to vector<1x80xf32>
    %c8_153 = arith.constant 8 : index
    %c0_154 = arith.constant 0 : index
    %146 = vector.load %arg19[%c8_153, %c0_154] : memref<10x80xf32, #tpu.memory_space<vmem>>, vector<1x80xf32>
    tpu.vector_store %arg19[%c8_153, %c0_154], %145 {strides = array<i32>} : memref<10x80xf32, #tpu.memory_space<vmem>>, vector<1x80xf32>,
    %c1_155 = arith.constant 1 : index
    %c0_156 = arith.constant 0 : index
    %147 = vector.load %arg19[%c1_155, %c0_156] : memref<10x80xf32, #tpu.memory_space<vmem>>, vector<8x80xf32>
    %c1_157 = arith.constant 1 : index
    %c0_158 = arith.constant 0 : index
    %c0_159 = arith.constant 0 : index
    %148 = vector.load %arg12[%c1_157, %c0_158, %c0_159] : memref<3x80x64xf32, #tpu.memory_space<vmem>>, vector<1x80x64xf32>
    %149 = vector.shape_cast %148 : vector<1x80x64xf32> to vector<80x64xf32>
    %cst_160 = arith.constant dense<0.000000e+00> : vector<8x64xf32>
    %150 = tpu.matmul %147, %149, %cst_160 {dimension_numbers = #tpu.dot_dimension_numbers<[1], [0], [0], [1], [0, 0, 1, 1], [], []>} : vector<8x80xf32>, vector<80x64xf32>, vector<8x64xf32> -> vector<8x64xf32>
    %c0_161 = arith.constant 0 : index
    %c0_162 = arith.constant 0 : index
    %151 = vector.load %arg13[%c0_161, %c0_162] : memref<1x64xf32, #tpu.memory_space<vmem>>, vector<1x64xf32>
    %152 = vector.broadcast %151 : vector<1x64xf32> to vector<8x64xf32>
    %153 = arith.addf %150, %152 : vector<8x64xf32>
    %c1_163 = arith.constant 1 : index
    %c0_164 = arith.constant 0 : index
    %154 = vector.load %arg19[%c1_163, %c0_164] : memref<10x80xf32, #tpu.memory_space<vmem>>, vector<8x80xf32>
    %c2_165 = arith.constant 2 : index
    %c0_166 = arith.constant 0 : index
    %c0_167 = arith.constant 0 : index
    %155 = vector.load %arg12[%c2_165, %c0_166, %c0_167] : memref<3x80x64xf32, #tpu.memory_space<vmem>>, vector<1x80x64xf32>
    %156 = vector.shape_cast %155 : vector<1x80x64xf32> to vector<80x64xf32>
    %cst_168 = arith.constant dense<0.000000e+00> : vector<8x64xf32>
    %157 = tpu.matmul %154, %156, %cst_168 {dimension_numbers = #tpu.dot_dimension_numbers<[1], [0], [0], [1], [0, 0, 1, 1], [], []>} : vector<8x80xf32>, vector<80x64xf32>, vector<8x64xf32> -> vector<8x64xf32>
    %c2_169 = arith.constant 2 : index
    %c0_170 = arith.constant 0 : index
    %158 = vector.load %arg19[%c2_169, %c0_170] : memref<10x80xf32, #tpu.memory_space<vmem>>, vector<8x80xf32>
    %c0_171 = arith.constant 0 : index
    %c0_172 = arith.constant 0 : index
    %c0_173 = arith.constant 0 : index
    %159 = vector.load %arg12[%c0_171, %c0_172, %c0_173] : memref<3x80x64xf32, #tpu.memory_space<vmem>>, vector<1x80x64xf32>
    %160 = vector.shape_cast %159 : vector<1x80x64xf32> to vector<80x64xf32>
    %cst_174 = arith.constant dense<0.000000e+00> : vector<8x64xf32>
    %161 = tpu.matmul %158, %160, %cst_174 {dimension_numbers = #tpu.dot_dimension_numbers<[1], [0], [0], [1], [0, 0, 1, 1], [], []>} : vector<8x80xf32>, vector<80x64xf32>, vector<8x64xf32> -> vector<8x64xf32>
    %162 = arith.addf %157, %161 : vector<8x64xf32>
    %c0_175 = arith.constant 0 : index
    %c0_176 = arith.constant 0 : index
    %163 = vector.load %arg13[%c0_175, %c0_176] : memref<1x64xf32, #tpu.memory_space<vmem>>, vector<1x64xf32>
    %164 = vector.broadcast %163 : vector<1x64xf32> to vector<8x64xf32>
    %165 = arith.addf %162, %164 : vector<8x64xf32>
    %c0_177 = arith.constant 0 : index
    %c0_178 = arith.constant 0 : index
    %c0_179 = arith.constant 0 : index
    %166 = vector.load %arg14[%c0_177, %c0_178, %c0_179] : memref<1x16x64xf32, #tpu.memory_space<vmem>>, vector<1x8x64xf32>
    %167 = vector.shape_cast %166 : vector<1x8x64xf32> to vector<8x64xf32>
    %168 = vector.shape_cast %153 : vector<8x64xf32> to vector<1x8x64xf32>
    tpu.vector_store %arg14[%c0_177, %c0_178, %c0_179], %168 {strides = array<i32>} : memref<1x16x64xf32, #tpu.memory_space<vmem>>, vector<1x8x64xf32>,
    %c0_180 = arith.constant 0 : index
    %c8_181 = arith.constant 8 : index
    %c0_182 = arith.constant 0 : index
    %169 = vector.load %arg14[%c0_180, %c8_181, %c0_182] : memref<1x16x64xf32, #tpu.memory_space<vmem>>, vector<1x8x64xf32>
    %170 = vector.shape_cast %169 : vector<1x8x64xf32> to vector<8x64xf32>
    %171 = vector.shape_cast %165 : vector<8x64xf32> to vector<1x8x64xf32>
    tpu.vector_store %arg14[%c0_180, %c8_181, %c0_182], %171 {strides = array<i32>} : memref<1x16x64xf32, #tpu.memory_space<vmem>>, vector<1x8x64xf32>,
    return
  }
  func.func @transform_0(%arg0: i32) -> (i32, i32, i32) {
    %c0_i32 = arith.constant 0 : i32
    %c0_i32_0 = arith.constant 0 : i32
    %c0_i32_1 = arith.constant 0 : i32
    return %arg0, %c0_i32, %c0_i32_0 : i32, i32, i32
  }
  func.func @transform_1(%arg0: i32) -> (i32, i32, i32) {
    %c0_i32 = arith.constant 0 : i32
    %c0_i32_0 = arith.constant 0 : i32
    %c0_i32_1 = arith.constant 0 : i32
    return %arg0, %c0_i32, %c0_i32_0 : i32, i32, i32
  }
  func.func @transform_2(%arg0: i32) -> (i32, i32, i32) {
    %c0_i32 = arith.constant 0 : i32
    %c0_i32_0 = arith.constant 0 : i32
    %c0_i32_1 = arith.constant 0 : i32
    return %arg0, %c0_i32, %c0_i32_0 : i32, i32, i32
  }
  func.func @transform_3(%arg0: i32) -> (i32, i32, i32) {
    %c0_i32 = arith.constant 0 : i32
    %c0_i32_0 = arith.constant 0 : i32
    %c0_i32_1 = arith.constant 0 : i32
    %c0_i32_2 = arith.constant 0 : i32
    return %c0_i32, %c0_i32_0, %c0_i32_1 : i32, i32, i32
  }
  func.func @transform_4(%arg0: i32) -> (i32, i32) {
    %c0_i32 = arith.constant 0 : i32
    %c0_i32_0 = arith.constant 0 : i32
    %c0_i32_1 = arith.constant 0 : i32
    return %c0_i32, %c0_i32_0 : i32, i32
  }
  func.func @transform_5(%arg0: i32) -> (i32, i32, i32) {
    %c0_i32 = arith.constant 0 : i32
    %c0_i32_0 = arith.constant 0 : i32
    %c0_i32_1 = arith.constant 0 : i32
    %c0_i32_2 = arith.constant 0 : i32
    return %c0_i32, %c0_i32_0, %c0_i32_1 : i32, i32, i32
  }
  func.func @transform_6(%arg0: i32) -> (i32, i32, i32) {
    %c0_i32 = arith.constant 0 : i32
    %c0_i32_0 = arith.constant 0 : i32
    %c0_i32_1 = arith.constant 0 : i32
    %c0_i32_2 = arith.constant 0 : i32
    return %c0_i32, %c0_i32_0, %c0_i32_1 : i32, i32, i32
  }
  func.func @transform_7(%arg0: i32) -> (i32, i32) {
    %c0_i32 = arith.constant 0 : i32
    %c0_i32_0 = arith.constant 0 : i32
    %c0_i32_1 = arith.constant 0 : i32
    return %c0_i32, %c0_i32_0 : i32, i32
  }
  func.func @transform_8(%arg0: i32) -> (i32, i32, i32) {
    %c0_i32 = arith.constant 0 : i32
    %c0_i32_0 = arith.constant 0 : i32
    %c0_i32_1 = arith.constant 0 : i32
    %c0_i32_2 = arith.constant 0 : i32
    return %c0_i32, %c0_i32_0, %c0_i32_1 : i32, i32, i32
  }
  func.func @transform_9(%arg0: i32) -> (i32, i32, i32) {
    %c0_i32 = arith.constant 0 : i32
    %c0_i32_0 = arith.constant 0 : i32
    %c0_i32_1 = arith.constant 0 : i32
    %c0_i32_2 = arith.constant 0 : i32
    return %c0_i32, %c0_i32_0, %c0_i32_1 : i32, i32, i32
  }
  func.func @transform_10(%arg0: i32) -> (i32, i32) {
    %c0_i32 = arith.constant 0 : i32
    %c0_i32_0 = arith.constant 0 : i32
    %c0_i32_1 = arith.constant 0 : i32
    return %c0_i32, %c0_i32_0 : i32, i32
  }
  func.func @transform_11(%arg0: i32) -> (i32, i32, i32) {
    %c0_i32 = arith.constant 0 : i32
    %c0_i32_0 = arith.constant 0 : i32
    %c0_i32_1 = arith.constant 0 : i32
    %c0_i32_2 = arith.constant 0 : i32
    return %c0_i32, %c0_i32_0, %c0_i32_1 : i32, i32, i32
  }
  func.func @transform_12(%arg0: i32) -> (i32, i32) {
    %c0_i32 = arith.constant 0 : i32
    %c0_i32_0 = arith.constant 0 : i32
    %c0_i32_1 = arith.constant 0 : i32
    return %c0_i32, %c0_i32_0 : i32, i32
  }
  func.func @transform_13(%arg0: i32) -> (i32, i32, i32) {
    %c0_i32 = arith.constant 0 : i32
    %c0_i32_0 = arith.constant 0 : i32
    %c0_i32_1 = arith.constant 0 : i32
    return %arg0, %c0_i32, %c0_i32_0 : i32, i32, i32
  }
}

</mosaic_0001>

<bundles_post_ra>
// kernel: hourglass_2_forward.1
= control target key start
LH: loop header
LB: loop body
LE: loop exit
PB: predicated region body
PF: predicated region fallthrough
CT: control target
= control target key end

     0   :  { %s2979_s25 = smov 0   ;;  %s3787_s0 = inlined_call_operand.vmem [shape: f32[2,18,72], index: 0, kind: input, shape index: {}]   ;;  %s3788_s1 = inlined_call_operand.vmem [shape: f32[2,8,80], index: 1, kind: input, shape index: {}]   ;;  %s3789_s2 = inlined_call_operand.vmem [shape: f32[2,4,96], index: 2, kind: input, shape index: {}]   ;;  %s3790_s3 = inlined_call_operand.vmem [shape: f32[3,72,80], index: 3, kind: input, shape index: {}]   ;;  %s3791_s4 = inlined_call_operand.vmem [shape: f32[1,80], index: 4, kind: input, shape index: {}]   ;;  %s3792_s5 = inlined_call_operand.vmem [shape: f32[3,80,80], index: 5, kind: input, shape index: {}]   ;;  %s3793_s6 = inlined_call_operand.vmem [shape: f32[3,80,48], index: 6, kind: input, shape index: {}]   ;;  %s3794_s7 = inlined_call_operand.vmem [shape: f32[1,48], index: 7, kind: input, shape index: {}]   ;;  %s3795_s8 = inlined_call_operand.vmem [shape: f32[3,48,96], index: 8, kind: input, shape index: {}]   ;;  %s3796_s9 = inlined_call_operand.vmem [shape: f32[3,96,80], index: 9, kind: input, shape index: {}]   ;;  %s3797_s10 = inlined_call_operand.vmem [shape: f32[1,80], index: 10, kind: input, shape index: {}]   ;;  %s3798_s11 = inlined_call_operand.vmem [shape: f32[3,80,64], index: 11, kind: input, shape index: {}]   ;;  %s3799_s12 = inlined_call_operand.vmem [shape: f32[1,64], index: 12, kind: input, shape index: {}]   ;;  %s3800_s13 = inlined_call_operand.vmem [shape: f32[2,16,64], index: 13, kind: output, shape index: {}]  }
   0x1 LB: > { %s2154_s26 = sadd.s32 4294967295, %s2905_s25   ;;  %p2158_p0 = scmp.ge.s32.totalorder %s2905_s25, 1  ;;  %s2905_s25 = sphi %s2979_s25, %s23_s25  }
   0x2   : > { %p405_p1 = scmp.lt.s32.totalorder %s2905_s25, 3 }
   0x4   : > { %p406_p2 = pnand %p2158_p0, %p405_p1 }
   0x5   : > { %p457_p3 = scmp.lt.s32.totalorder (!%p406_p2), %s2154_s26, 1 }
   0x6   : > { %409 = sbr.rel (%p406_p2) target bundleno = 1387 (0x56b), region = 72 }
   0xb   : > { %v2172_v0 = vld [vmem:[%s3790_s3 + $0x88] sm:$0xff]  ;;  %v496_v1 = vld [vmem:[%s3790_s3 + $0x40] sm:$0xff]  ;;  %v2907_v2 = vmov 0.0   ;;  %v495_v4 = vld [vmem:[%s3790_s3 + $0x38] sm:$0xff]  ;;  %s3802_s26 = smov (!%p457_p3, %s2154_s26), 1  ;;  %vm508_vm0 = vcmask 588800  }
   0xc   : > { %2492 = vmatprep.subr.mxu0 %v2907_v2  ;;  %2513 = vmatprep.subr.mxu1 %v2907_v2  ;;  %v2171_v3 = vld [vmem:[%s3790_s3 + $0x80] sm:$0xff]  ;;  %v2170_v5 = vld [vmem:[%s3790_s3 + $0x78] sm:$0xff]  ;;  %v494_v6 = vld [vmem:[%s3790_s3 + $0x30] sm:$0xff]  ;;  %s2888_s19 = smul.u32 24, %s3802_s26  ;;  %vm2908_vm1 = vmmov 0   ;;  %vm475_vm2 = vcmask 654336  }
   0xd   : > { %2493 = vmatpush3.msra.mxu0 %v2172_v0  ;;  %2514 = vmatpush3.msra.mxu1 %v496_v1  ;;  %v2169_v7 = vld [vmem:[%s3790_s3 + $0x70] sm:$0xff]  ;;  %v493_v8 = vld [vmem:[%s3790_s3 + $0x28] sm:$0xff]  ;;  %v492_v10 = vld [vmem:[%s3790_s3 + $0x20] sm:$0xff]  ;;  %vm477_vm3 = vcmask 648192   ;;  %476 = vst.msk [vmem:[#allocation2] sm:$0xff] %vm475_vm2, %v2907_v2  ;;  %s2160_s21 = sshll.u32 %s3802_s26, 3 }
   0xe   : > { %2494 = vmatprep.subr.mxu0 %v2907_v2  ;;  %2515 = vmatprep.subr.mxu1 %v2907_v2  ;;  %v2168_v9 = vld [vmem:[%s3790_s3 + $0x68] sm:$0xff]  ;;  %v2167_v11 = vld [vmem:[%s3790_s3 + $0x60] sm:$0xff]  ;;  %v491_v12 = vld [vmem:[%s3790_s3 + $0x18] sm:$0xff]  ;;  %s3055_s15 = scalar_lea.vmem %s3787_s0, %s2888_s19  ;;  %478 = vst.msk [vmem:[#allocation2 + $0x8] sm:$0x3] %vm477_vm3, %v2907_v2  ;;  %s465_s24 = scalar_lea.vmem %s3788_s1, %s2160_s21  ;;  %vm1008_vm4 = vcmask 647168  }
   0xf   : > { %2495 = vmatpush3.msra.mxu0 %v2171_v3  ;;  %2516 = vmatpush3.msra.mxu1 %v495_v4  ;;  %v2166_v13 = vld [vmem:[%s3790_s3 + $0x58] sm:$0xff]  ;;  %v490_v14 = vld [vmem:[%s3790_s3 + $0x10] sm:$0xff]  ;;  %v489_v16 = vld [vmem:[%s3790_s3 + $0x8] sm:$0xff]  ;;  %480 = vst.msk [vmem:[#allocation3 + $0x8] sm:$0x3] %vm477_vm3, %v2907_v2  ;;  %vm1010_vm5 = vcmask 648193  }
  0x10   : > { %2496 = vmatprep.subr.mxu0 %v2907_v2  ;;  %2517 = vmatprep.subr.mxu1 %v2907_v2  ;;  %v2165_v15 = vld [vmem:[%s3790_s3 + $0x50] sm:$0xff]  ;;  %v2164_v17 = vld [vmem:[%s3790_s3 + $0x48] sm:$0xff]  ;;  %v488_v19 = vld [vmem:[%s3790_s3] sm:$0xff]  ;;  %479 = vst.msk [vmem:[#allocation3] sm:$0xff] %vm475_vm2, %v2907_v2  ;;  %vm1012_vm6 = vcmask 649218   ;;  %vm1014_vm7 = vcmask 650243  }
  0x11   : > { %2497 = vmatpush3.msra.mxu0 %v2170_v5  ;;  %2518 = vmatpush3.msra.mxu1 %v494_v6  ;;  %v497_v18 = vld [vmem:[%s3055_s15 + $0x9] sm:$0xff]  ;;  %v487_v20 = vld [vmem:[%s3055_s15] sm:$0xff]  ;;  %v2180_v24 = vld [vmem:[%s3790_s3 + $0xb8] sm:$0xff]  ;;  %485 = vst.msk [vmem:[#allocation6] sm:$0xff] %vm475_vm2, %v2907_v2  ;;  %vm1016_vm8 = vcmask 651268   ;;  %vm1018_vm9 = vcmask 652293  }
  0x12   : > { %2498 = vmatprep.subr.mxu0 %v2907_v2  ;;  %2519 = vmatprep.subr.mxu1 %v2907_v2  ;;  %v2183_v21 = vld [vmem:[%s3790_s3 + $0xd0] sm:$0xff]  ;;  %v2182_v22 = vld [vmem:[%s3790_s3 + $0xc8] sm:$0xff]  ;;  %v2181_v23 = vld [vmem:[%s3790_s3 + $0xc0] sm:$0xff]  ;;  %486 = vst.msk [vmem:[#allocation6 + $0x8] sm:$0x3] %vm477_vm3, %v2907_v2  ;;  %vm1020_vm10 = vcmask 653318  }
  0x13   : > { %2499 = vmatpush3.msra.mxu0 %v2169_v7  ;;  %2520 = vmatpush3.msra.mxu1 %v493_v8  ;;  %v2179_v25 = vld [vmem:[%s3790_s3 + $0xb0] sm:$0xff]  ;;  %v2178_v26 = vld [vmem:[%s3790_s3 + $0xa8] sm:$0xff]  ;;  %v2177_v27 = vld [vmem:[%s3790_s3 + $0xa0] sm:$0xff]  ;;  %vm1022_vm11 = vcmask 654343   ;;  %vm481_vm12 = vcmask 390144   ;;  %vm1288_vm13 = vcmask 388096  }
  0x14   : > { %2500 = vmatprep.subr.mxu0 %v2907_v2  ;;  %2521 = vmatprep.subr.mxu1 %v2907_v2  ;;  %v2176_v28 = vld [vmem:[%s3790_s3 + $0x98] sm:$0xff]  ;;  %v2175_v29 = vld [vmem:[%s3790_s3 + $0x90] sm:$0xff]  ;;  %v655_v30 = vld [vmem:[%s3055_s15 + $0x1] sm:$0xff]  ;;  %482 = vst.msk [vmem:[#allocation4] sm:$0x3f] %vm481_vm12, %v2907_v2  ;;  %vm1305_vm14 = vcmask 392192  }
  0x15   : > { %2501 = vmatpush3.msra.mxu0 %v2168_v9  ;;  %2522 = vmatpush3.msra.mxu1 %v492_v10  ;;  %v2195_v31 = vld [vmem:[%s3792_s5 + $0x98] sm:$0xff]  ;;  %v760_v32 = vld [vmem:[%s3792_s5 + $0x48] sm:$0xff]  ;;  %v2194_v33 = vld [vmem:[%s3792_s5 + $0x90] sm:$0xff]  ;;  %vm483_vm15 = vcmask 783360   ;;  %s2161_s28 = sshll.u32 %s3802_s26, 2  ;;  %vm1579_vm3 = vcmask 785408  }
  0x16   : > { %2502 = vmatprep.subr.mxu0 %v2907_v2  ;;  %2523 = vmatprep.subr.mxu1 %v2907_v2  ;;  %v759_v34 = vld [vmem:[%s3792_s5 + $0x40] sm:$0xff]  ;;  %v2193_v35 = vld [vmem:[%s3792_s5 + $0x88] sm:$0xff]  ;;  %v758_v36 = vld [vmem:[%s3792_s5 + $0x38] sm:$0xff]  ;;  %484 = vst.msk [vmem:[#allocation5] sm:$0x3f] %vm483_vm15, %v2907_v2  ;;  %s469_s15 = scalar_lea.vmem %s3789_s2, %s2161_s28  ;;  %s2302_s28 = sshll.u32 %s3802_s26, 4 }
  0x17   : > { %2503 = vmatpush3.msra.mxu0 %v2167_v11  ;;  %2524 = vmatpush3.msra.mxu1 %v491_v12  ;;  %v2192_v37 = vld [vmem:[%s3792_s5 + $0x80] sm:$0xff]  ;;  %v757_v38 = vld [vmem:[%s3792_s5 + $0x30] sm:$0xff]  ;;  %v2191_v39 = vld [vmem:[%s3792_s5 + $0x78] sm:$0xff]  ;;  %s474_s16 = scalar_lea.vmem %s3800_s13, %s2302_s28 }
  0x18   : > { %2504 = vmatprep.subr.mxu0 %v2907_v2  ;;  %2525 = vmatprep.subr.mxu1 %v2907_v2  ;;  %v756_v40 = vld [vmem:[%s3792_s5 + $0x28] sm:$0xff]  ;;  %v2190_v41 = vld [vmem:[%s3792_s5 + $0x70] sm:$0xff]  ;;  %v755_v42 = vld [vmem:[%s3792_s5 + $0x20] sm:$0xff] }
  0x19   : > { %2505 = vmatpush3.msra.mxu0 %v2166_v13  ;;  %2526 = vmatpush3.msra.mxu1 %v490_v14  ;;  %v2189_v43 = vld [vmem:[%s3792_s5 + $0x68] sm:$0xff]  ;;  %v754_v44 = vld [vmem:[%s3792_s5 + $0x18] sm:$0xff]  ;;  %v2188_v45 = vld [vmem:[%s3792_s5 + $0x60] sm:$0xff] }
  0x1a   : > { %2506 = vmatprep.subr.mxu0 %v2907_v2  ;;  %2527 = vmatprep.subr.mxu1 %v2907_v2  ;;  %v753_v46 = vld [vmem:[%s3792_s5 + $0x10] sm:$0xff]  ;;  %v2187_v47 = vld [vmem:[%s3792_s5 + $0x58] sm:$0xff]  ;;  %v752_v48 = vld [vmem:[%s3792_s5 + $0x8] sm:$0xff] }
  0x1b   : > { %2507 = vmatpush3.msra.mxu0 %v2165_v15  ;;  %2528 = vmatpush3.msra.mxu1 %v489_v16  ;;  %v2186_v49 = vld [vmem:[%s3792_s5 + $0x50] sm:$0xff]  ;;  %v751_v50 = vld [vmem:[%s3792_s5] sm:$0xff]  ;;  %v2207_v62 = vld [vmem:[%s3792_s5 + $0xe8] sm:$0xff] }
  0x1c   : > { %2508 = vmatprep.subr.mxu0 %v2907_v2  ;;  %2510 = vmatprep.mubr.msk.f32.mxu0 %vm2908_vm1, %v2907_v2  ;;  %v2185_v57 = vld [vmem:[%s3791_s4] ss:$0 sm:$0xff]  ;;  %v2205_v3 = vld [vmem:[%s3792_s5 + $0xd8] sm:$0xff]  ;;  %v2204_v4 = vld [vmem:[%s3792_s5 + $0xd0] sm:$0xff] }
  0x1d   : > { %2509 = vmatpush3.msra.mxu0 %v2164_v17  ;;  %2529 = vmatprep.subr.mxu1 %v2907_v2  ;;  %v2206_v1 = vld [vmem:[%s3792_s5 + $0xe0] sm:$0xff]  ;;  %v2203_v5 = vld [vmem:[%s3792_s5 + $0xc8] sm:$0xff]  ;;  %v2201_v7 = vld [vmem:[%s3792_s5 + $0xb8] sm:$0xff] }
  0x1e   : > { %2511 = vmatmul.mubr.msk.f32.vlgmr.msra.gmra.mxu0 %vm508_vm0, %v497_v18  ;;  %2530 = vmatpush3.msra.mxu1 %v488_v19  ;;  %v2202_v6 = vld [vmem:[%s3792_s5 + $0xc0] sm:$0xff]  ;;  %v2200_v8 = vld [vmem:[%s3792_s5 + $0xb0] sm:$0xff]  ;;  %v2199_v9 = vld [vmem:[%s3792_s5 + $0xa8] sm:$0xff] }
  0x1f   : > { %2531 = vmatprep.mubr.msk.f32.mxu1 %vm2908_vm1, %v2907_v2  ;;  %2534 = vmatprep.subr.mxu0 %v2907_v2  ;;  %v2198_v10 = vld [vmem:[%s3792_s5 + $0xa0] sm:$0xff]  ;;  %v2218_v12 = vld [vmem:[%s3793_s6 + $0x98] sm:$0xff]  ;;  %v1034_v13 = vld [vmem:[%s3793_s6 + $0x48] sm:$0xff] }
  0x20   : > { %2532 = vmatmul.mubr.msk.f32.vlgmr.msra.gmra.mxu1 %vm508_vm0, %v487_v20  ;;  %2535 = vmatpush3.msra.mxu0 %v2183_v21  ;;  %v2217_v14 = vld [vmem:[%s3793_s6 + $0x90] sm:$0xff]  ;;  %v1033_v15 = vld [vmem:[%s3793_s6 + $0x40] sm:$0xff]  ;;  %v2216_v16 = vld [vmem:[%s3793_s6 + $0x88] sm:$0xff] }
  0x21   : > { %2536 = vmatprep.subr.mxu0 %v2907_v2  ;;  %2552 = vmatprep.mubr.msk.f32.mxu0 %vm2908_vm1, %v2907_v2  ;;  %v1032_v17 = vld [vmem:[%s3793_s6 + $0x38] sm:$0xff]  ;;  %v2215_v18 = vld [vmem:[%s3793_s6 + $0x80] sm:$0xff]  ;;  %v1031_v19 = vld [vmem:[%s3793_s6 + $0x30] sm:$0xff] }
  0x22   : > { %2537 = vmatpush3.msra.mxu0 %v2182_v22  ;;  %2555 = vmatprep.subr.mxu1 %v2907_v2  ;;  %v2214_v20 = vld [vmem:[%s3793_s6 + $0x78] sm:$0xff]  ;;  %v1030_v21 = vld [vmem:[%s3793_s6 + $0x28] sm:$0xff]  ;;  %v2213_v22 = vld [vmem:[%s3793_s6 + $0x70] sm:$0xff] }
  0x23   : > { %2538 = vmatprep.subr.mxu0 %v2907_v2  ;;  %2575 = vmatprep.mubr.msk.f32.mxu1 %vm2908_vm1, %v2907_v2 }
  0x24   : > { %2539 = vmatpush3.msra.mxu0 %v2181_v23  ;;  %2556 = vmatpush3.msra.mxu1 %v2195_v31  ;;  %v1029_v23 = vld [vmem:[%s3793_s6 + $0x20] sm:$0xff] }
  0x25   : > { %2540 = vmatprep.subr.mxu0 %v2907_v2  ;;  %2557 = vmatprep.subr.mxu1 %v2907_v2  ;;  %v1025_v31 = vld [vmem:[%s3793_s6] sm:$0xff] }
  0x26   : > { %2541 = vmatpush3.msra.mxu0 %v2180_v24  ;;  %2558 = vmatpush3.msra.mxu1 %v2194_v33  ;;  %v2212_v24 = vld [vmem:[%s3793_s6 + $0x68] sm:$0xff] }
  0x27   : > { %2542 = vmatprep.subr.mxu0 %v2907_v2  ;;  %2559 = vmatprep.subr.mxu1 %v2907_v2 }
  0x28   : > { %2543 = vmatpush3.msra.mxu0 %v2179_v25  ;;  %2560 = vmatpush3.msra.mxu1 %v2193_v35  ;;  %v1028_v25 = vld [vmem:[%s3793_s6 + $0x18] sm:$0xff] }
  0x29   : > { %2544 = vmatprep.subr.mxu0 %v2907_v2  ;;  %2561 = vmatprep.subr.mxu1 %v2907_v2 }
  0x2a   : > { %2545 = vmatpush3.msra.mxu0 %v2178_v26  ;;  %2562 = vmatpush3.msra.mxu1 %v2192_v37  ;;  %v2211_v26 = vld [vmem:[%s3793_s6 + $0x60] sm:$0xff] }
  0x2b   : > { %2546 = vmatprep.subr.mxu0 %v2907_v2  ;;  %2563 = vmatprep.subr.mxu1 %v2907_v2 }
  0x2c   : > { %2547 = vmatpush3.msra.mxu0 %v2177_v27  ;;  %2564 = vmatpush3.msra.mxu1 %v2191_v39  ;;  %v1027_v27 = vld [vmem:[%s3793_s6 + $0x10] sm:$0xff] }
  0x2d   : > { %2548 = vmatprep.subr.mxu0 %v2907_v2  ;;  %2565 = vmatprep.subr.mxu1 %v2907_v2 }
  0x2e   : > { %2549 = vmatpush3.msra.mxu0 %v2176_v28  ;;  %2566 = vmatpush3.msra.mxu1 %v2190_v41  ;;  %v2210_v28 = vld [vmem:[%s3793_s6 + $0x58] sm:$0xff] }
  0x2f   : > { %2550 = vmatprep.subr.mxu0 %v2907_v2  ;;  %2567 = vmatprep.subr.mxu1 %v2907_v2 }
  0x30   : > { %2551 = vmatpush3.msra.mxu0 %v2175_v29  ;;  %2568 = vmatpush3.msra.mxu1 %v2189_v43  ;;  %v1026_v29 = vld [vmem:[%s3793_s6 + $0x8] sm:$0xff] }
  0x31   : > { %2553 = vmatmul.mubr.msk.f32.vlgmr.msra.gmra.mxu0 %vm508_vm0, %v655_v30  ;;  %2578 = vmatprep.subr.mxu0 %v2907_v2  ;;  %v2209_v30 = vld [vmem:[%s3793_s6 + $0x50] sm:$0xff]  ;;  %v2230_v43 = vld [vmem:[%s3793_s6 + $0xe8] sm:$0xff]  ;;  %vm1537_vm0 = vcmask 781312  }
  0x32   : > { %2598 = vmatprep.mubr.msk.f32.mxu0 %vm2908_vm1, %v2907_v2  ;;  %2579 = vmatpush3.msra.mxu0 %v760_v32 }
  0x33   : > { %2580 = vmatprep.subr.mxu0 %v2907_v2  ;;  %2569 = vmatprep.subr.mxu1 %v2907_v2 }
  0x34   : > { %2581 = vmatpush3.msra.mxu0 %v759_v34  ;;  %2570 = vmatpush3.msra.mxu1 %v2188_v45 }
  0x35   : > { %2582 = vmatprep.subr.mxu0 %v2907_v2  ;;  %2571 = vmatprep.subr.mxu1 %v2907_v2 }
  0x36   : > { %2583 = vmatpush3.msra.mxu0 %v758_v36  ;;  %2572 = vmatpush3.msra.mxu1 %v2187_v47  ;;  %v2228_v47 = vld [vmem:[%s3793_s6 + $0xd8] sm:$0xff] }
  0x37   : > { %2584 = vmatprep.subr.mxu0 %v2907_v2  ;;  %2573 = vmatprep.subr.mxu1 %v2907_v2 }
  0x38   : > { %2585 = vmatpush3.msra.mxu0 %v757_v38  ;;  %2574 = vmatpush3.msra.mxu1 %v2186_v49  ;;  %v1005_v38 = vld [vmem:[%s465_s24] sm:$0xff]  ;;  %v2226_v49 = vld [vmem:[%s3793_s6 + $0xc8] sm:$0xff] }
  0x39   : > { %2586 = vmatprep.subr.mxu0 %v2907_v2  ;;  %2601 = vmatprep.subr.mxu1 %v2907_v2 }
  0x3a   : > { %2587 = vmatpush3.msra.mxu0 %v756_v40 }
  0x3b   : > { %2588 = vmatprep.subr.mxu0 %v2907_v2 }
  0x3c   : > { %2589 = vmatpush3.msra.mxu0 %v755_v42 }
  0x3d   : > { %2590 = vmatprep.subr.mxu0 %v2907_v2 }
  0x3e   : > { %2591 = vmatpush3.msra.mxu0 %v754_v44 }
  0x3f   : > { %2592 = vmatprep.subr.mxu0 %v2907_v2 }
  0x40   : > { %2593 = vmatpush3.msra.mxu0 %v753_v46  ;;  %v2229_v46 = vld [vmem:[%s3793_s6 + $0xe0] sm:$0xff] }
  0x41   : > { %2594 = vmatprep.subr.mxu0 %v2907_v2 }
  0x42   : > { %2595 = vmatpush3.msra.mxu0 %v752_v48  ;;  %v2227_v48 = vld [vmem:[%s3793_s6 + $0xd0] sm:$0xff] }
  0x43   : > { %2596 = vmatprep.subr.mxu0 %v2907_v2 }
  0x44   : > { %2597 = vmatpush3.msra.mxu0 %v751_v50  ;;  %v2225_v50 = vld [vmem:[%s3793_s6 + $0xc0] sm:$0xff] }
  0x45   : > { %2624 = vmatprep.subr.mxu0 %v2907_v2 }
  0xde   : > { %v578_v51 = vpop.f32.mrf.mxu0 }
  0xe0   : > { %v651_v52 = vpop.f32.mrf.mxu1  ;;  %v2512_v53 = vpop.f32.mrf.mxu0 }
  0xe1   : > { %v652_v55 = vadd.f32 %v651_v52, %v578_v51  ;;  %v2224_v51 = vld [vmem:[%s3793_s6 + $0xb8] sm:$0xff]  ;;  %v2223_v52 = vld [vmem:[%s3793_s6 + $0xb0] sm:$0xff]  ;;  %v2222_v53 = vld [vmem:[%s3793_s6 + $0xa8] sm:$0xff] }
  0xe2   : > { %v2533_v54 = vpop.f32.mrf.mxu1 }
  0xe3   : > { %v2221_v54 = vld [vmem:[%s3793_s6 + $0xa0] sm:$0xff] }
  0xf1   : > { %v735_v56 = vpop.f32.mrf.mxu0 }
  0xf2   : > { %v739_v58 = vadd.f32 %v735_v56, %v652_v55  ;;  %v2238_v56 = vld [vmem:[%s3795_s8 + $0x58] sm:$0xff] }
  0xf3   : > { %v2554_v59 = vpop.f32.mrf.mxu0 }
  0xf4   : > { %v747_v60 = vadd.f32 %v2185_v57, %v739_v58  ;;  %v2246_v57 = vld [vmem:[%s3795_s8 + $0x88] sm:$0xff]  ;;  %v2237_v58 = vld [vmem:[%s3795_s8 + $0x50] sm:$0xff]  ;;  %v2245_v59 = vld [vmem:[%s3795_s8 + $0x80] sm:$0xff] }
  0xf6   : > { %v748_v61 = vmax.f32 %v747_v60, 0.0  ;;  %v2236_v60 = vld [vmem:[%s3795_s8 + $0x48] sm:$0xff] }
  0xf8   : > { %749 = vst.msk [vmem:[#allocation2 + $0x1] sm:$0xff] %vm475_vm2, %v748_v61  ;;  %v2244_v61 = vld [vmem:[%s3795_s8 + $0x78] sm:$0xff] }
  0xff   : > { %v761_v63 = vld [vmem:[#allocation2 + $0x1] sm:$0xff] }
 0x100   : > { %v750_v0 = vld [vmem:[#allocation2] sm:$0xff]  ;;  %2576 = vmatmul.mubr.msk.f32.vlgmr.msra.gmra.mxu1 %vm475_vm2, %v761_v63  ;;  %v2243_v63 = vld [vmem:[%s3795_s8 + $0x70] sm:$0xff] }
 0x101   : > { %2599 = vmatmul.mubr.msk.f32.vlgmr.msra.gmra.mxu0 %vm475_vm2, %v750_v0  ;;  %2602 = vmatpush3.msra.mxu1 %v2207_v62  ;;  %v919_v11 = vld [vmem:[#allocation2 + $0x2] sm:$0xff]  ;;  %v2234_v0 = vld [vmem:[%s3795_s8 + $0x38] sm:$0xff] }
 0x102   : > { %2621 = vmatprep.mubr.msk.f32.mxu1 %vm2908_vm1, %v2907_v2  ;;  %2603 = vmatprep.subr.mxu1 %v2907_v2  ;;  %v2235_v62 = vld [vmem:[%s3795_s8 + $0x40] sm:$0xff] }
 0x103   : > { %2644 = vmatprep.mubr.msk.f32.mxu0 %vm2908_vm1, %v2907_v2  ;;  %2604 = vmatpush3.msra.mxu1 %v2206_v1  ;;  %v2242_v1 = vld [vmem:[%s3795_s8 + $0x68] sm:$0xff] }
 0x104   : > { %2605 = vmatprep.subr.mxu1 %v2907_v2  ;;  %2625 = vmatpush3.msra.mxu0 %v2218_v12 }
 0x105   : > { %2606 = vmatpush3.msra.mxu1 %v2205_v3  ;;  %2626 = vmatprep.subr.mxu0 %v2907_v2  ;;  %v2233_v3 = vld [vmem:[%s3795_s8 + $0x30] sm:$0xff] }
 0x106   : > { %2607 = vmatprep.subr.mxu1 %v2907_v2  ;;  %2627 = vmatpush3.msra.mxu0 %v2217_v14 }
 0x107   : > { %2608 = vmatpush3.msra.mxu1 %v2204_v4  ;;  %2628 = vmatprep.subr.mxu0 %v2907_v2  ;;  %v2241_v4 = vld [vmem:[%s3795_s8 + $0x60] sm:$0xff] }
 0x108   : > { %2609 = vmatprep.subr.mxu1 %v2907_v2  ;;  %2629 = vmatpush3.msra.mxu0 %v2216_v16  ;;  %v1296_v16 = vld [vmem:[%s3795_s8 + $0x28] sm:$0xff] }
 0x109   : > { %2610 = vmatpush3.msra.mxu1 %v2203_v5  ;;  %2630 = vmatprep.subr.mxu0 %v2907_v2 }
 0x10a   : > { %2611 = vmatprep.subr.mxu1 %v2907_v2  ;;  %2631 = vmatpush3.msra.mxu0 %v2215_v18 }
 0x10b   : > { %2612 = vmatpush3.msra.mxu1 %v2202_v6  ;;  %2632 = vmatprep.subr.mxu0 %v2907_v2 }
 0x10c   : > { %2613 = vmatprep.subr.mxu1 %v2907_v2  ;;  %2633 = vmatpush3.msra.mxu0 %v2214_v20  ;;  %v1294_v20 = vld [vmem:[%s3795_s8 + $0x18] sm:$0xff] }
 0x10d   : > { %2614 = vmatpush3.msra.mxu1 %v2201_v7  ;;  %2634 = vmatprep.subr.mxu0 %v2907_v2 }
 0x10e   : > { %2615 = vmatprep.subr.mxu1 %v2907_v2  ;;  %2635 = vmatpush3.msra.mxu0 %v2213_v22  ;;  %v1292_v22 = vld [vmem:[%s3795_s8 + $0x8] sm:$0xff] }
 0x10f   : > { %2616 = vmatpush3.msra.mxu1 %v2200_v8  ;;  %2636 = vmatprep.subr.mxu0 %v2907_v2 }
 0x110   : > { %2617 = vmatprep.subr.mxu1 %v2907_v2  ;;  %2637 = vmatpush3.msra.mxu0 %v2212_v24 }
 0x111   : > { %2618 = vmatpush3.msra.mxu1 %v2199_v9  ;;  %2638 = vmatprep.subr.mxu0 %v2907_v2 }
 0x112   : > { %2619 = vmatprep.subr.mxu1 %v2907_v2  ;;  %2639 = vmatpush3.msra.mxu0 %v2211_v26  ;;  %v2271_v26 = vld [vmem:[%s3796_s9 + $0x118] sm:$0xff] }
 0x113   : > { %2620 = vmatpush3.msra.mxu1 %v2198_v10  ;;  %2640 = vmatprep.subr.mxu0 %v2907_v2 }
 0x114   : > { %2622 = vmatmul.mubr.msk.f32.vlgmr.msra.gmra.mxu1 %vm475_vm2, %v919_v11  ;;  %2647 = vmatprep.subr.mxu1 %v2907_v2  ;;  %v2232_v11 = vld [vmem:[%s3794_s7] ss:$0 sm:$0xff] }
 0x115   : > { %2667 = vmatprep.mubr.msk.f32.mxu1 %vm2908_vm1, %v2907_v2  ;;  %2648 = vmatpush3.msra.mxu1 %v1034_v13 }
 0x116   : > { %2649 = vmatprep.subr.mxu1 %v2907_v2  ;;  %2641 = vmatpush3.msra.mxu0 %v2210_v28  ;;  %v2270_v28 = vld [vmem:[%s3796_s9 + $0x110] sm:$0xff] }
 0x117   : > { %2650 = vmatpush3.msra.mxu1 %v1033_v15  ;;  %2642 = vmatprep.subr.mxu0 %v2907_v2 }
 0x118   : > { %2651 = vmatprep.subr.mxu1 %v2907_v2  ;;  %2643 = vmatpush3.msra.mxu0 %v2209_v30  ;;  %v2269_v30 = vld [vmem:[%s3796_s9 + $0x108] sm:$0xff] }
 0x119   : > { %2652 = vmatpush3.msra.mxu1 %v1032_v17  ;;  %2670 = vmatprep.subr.mxu0 %v2907_v2 }
 0x11a   : > { %2653 = vmatprep.subr.mxu1 %v2907_v2 }
 0x11b   : > { %2654 = vmatpush3.msra.mxu1 %v1031_v19  ;;  %v1295_v19 = vld [vmem:[%s3795_s8 + $0x20] sm:$0xff] }
 0x11c   : > { %2655 = vmatprep.subr.mxu1 %v2907_v2 }
 0x11d   : > { %2656 = vmatpush3.msra.mxu1 %v1030_v21  ;;  %v1293_v21 = vld [vmem:[%s3795_s8 + $0x10] sm:$0xff] }
 0x11e   : > { %2657 = vmatprep.subr.mxu1 %v2907_v2 }
 0x11f   : > { %2658 = vmatpush3.msra.mxu1 %v1029_v23  ;;  %v1291_v23 = vld [vmem:[%s3795_s8] sm:$0xff] }
 0x120   : > { %2659 = vmatprep.subr.mxu1 %v2907_v2 }
 0x121   : > { %2660 = vmatpush3.msra.mxu1 %v1028_v25  ;;  %v1578_v25 = vld [vmem:[%s3796_s9 + $0x58] sm:$0xff] }
 0x122   : > { %2661 = vmatprep.subr.mxu1 %v2907_v2 }
 0x123   : > { %2662 = vmatpush3.msra.mxu1 %v1027_v27  ;;  %v1577_v27 = vld [vmem:[%s3796_s9 + $0x50] sm:$0xff] }
 0x124   : > { %2663 = vmatprep.subr.mxu1 %v2907_v2 }
 0x125   : > { %2664 = vmatpush3.msra.mxu1 %v1026_v29  ;;  %v1576_v29 = vld [vmem:[%s3796_s9 + $0x48] sm:$0xff] }
 0x126   : > { %2665 = vmatprep.subr.mxu1 %v2907_v2 }
 0x127   : > { %2666 = vmatpush3.msra.mxu1 %v1025_v31  ;;  %v1575_v31 = vld [vmem:[%s3796_s9 + $0x40] sm:$0xff] }
 0x128   : > { %2693 = vmatprep.subr.mxu1 %v2907_v2 }
 0x1c0   : > { %v842_v32 = vpop.f32.mrf.mxu1 }
 0x1c1   : > { %v915_v33 = vpop.f32.mrf.mxu0 }
 0x1c2   : > { %v2577_v34 = vpop.f32.mrf.mxu1  ;;  %v916_v36 = vadd.f32 %v915_v33, %v842_v32  ;;  %v2268_v32 = vld [vmem:[%s3796_s9 + $0x100] sm:$0xff]  ;;  %v1574_v33 = vld [vmem:[%s3796_s9 + $0x38] sm:$0xff] }
 0x1c3   : > { %v2600_v35 = vpop.f32.mrf.mxu0  ;;  %v2267_v34 = vld [vmem:[%s3796_s9 + $0xf8] sm:$0xff] }
 0x1c4   : > { %v1573_v35 = vld [vmem:[%s3796_s9 + $0x30] sm:$0xff] }
 0x1d4   : > { %v1000_v37 = vpop.f32.mrf.mxu1 }
 0x1d5   : > { %v1004_v39 = vadd.f32 %v1000_v37, %v916_v36  ;;  %v2266_v36 = vld [vmem:[%s3796_s9 + $0xf0] sm:$0xff]  ;;  %v1572_v37 = vld [vmem:[%s3796_s9 + $0x28] sm:$0xff] }
 0x1d6   : > { %v2623_v40 = vpop.f32.mrf.mxu1 }
 0x1d7   : > { %v1006_v41 = vadd.f32 %v1005_v38, %v1004_v39  ;;  %v2265_v38 = vld [vmem:[%s3796_s9 + $0xe8] sm:$0xff]  ;;  %v1571_v39 = vld [vmem:[%s3796_s9 + $0x20] sm:$0xff] }
 0x1d8   : > { %v2264_v40 = vld [vmem:[%s3796_s9 + $0xe0] sm:$0xff] }
 0x1d9   : > { %v1007_v42 = vmax.f32 %v1006_v41, 0.0  ;;  %v1570_v41 = vld [vmem:[%s3796_s9 + $0x18] sm:$0xff] }
 0x1db   : > { %1009 = vst.msk [vmem:[#allocation3 + $0x5] sm:$0x1] %vm1008_vm4, %v1007_v42 }
 0x1dc   : > { %1011 = vst.msk [vmem:[#allocation3] sm:$0x2] %vm1010_vm5, %v1007_v42 }
 0x1dd   : > { %1013 = vst.msk [vmem:[#allocation3 + $0x4] sm:$0x4] %vm1012_vm6, %v1007_v42 }
 0x1de   : > { %1015 = vst.msk [vmem:[#allocation3 - $0x1] sm:$0x8] %vm1014_vm7, %v1007_v42 }
 0x1df   : > { %1017 = vst.msk [vmem:[#allocation3 + $0x3] sm:$0x10] %vm1016_vm8, %v1007_v42 }
 0x1e0   : > { %1019 = vst.msk [vmem:[#allocation3 - $0x2] sm:$0x20] %vm1018_vm9, %v1007_v42 }
 0x1e1   : > { %1021 = vst.msk [vmem:[#allocation3 + $0x2] sm:$0x40] %vm1020_vm10, %v1007_v42 }
 0x1e2   : > { %1023 = vst.msk [vmem:[#allocation3 - $0x3] sm:$0x80] %vm1022_vm11, %v1007_v42  ;;  %v2263_v42 = vld [vmem:[%s3796_s9 + $0xd8] sm:$0xff] }
 0x1e7   : > { %v1024_v45 = vld [vmem:[#allocation3] sm:$0xf] }
 0x1e8   : > { %v1035_v44 = vld [vmem:[#allocation3 + $0x5] sm:$0xf]  ;;  %2668 = vmatmul.mubr.msk.f32.vlgmr.msra.gmra.mxu1 %vm475_vm2, %v1024_v45  ;;  %v1568_v45 = vld [vmem:[%s3796_s9 + $0x8] sm:$0xff] }
 0x1e9   : > { %2645 = vmatmul.mubr.msk.f32.vlgmr.msra.gmra.mxu0 %vm475_vm2, %v1035_v44  ;;  %2705 = vmatprep.mubr.msk.f32.mxu1 %vm2908_vm1, %v2907_v2  ;;  %v1193_v55 = vld [vmem:[#allocation3 + $0x1] sm:$0xf] }
 0x1ea   : > { %2671 = vmatpush3.msra.mxu0 %v2230_v43  ;;  %2690 = vmatprep.mubr.msk.f32.mxu0 %vm2908_vm1, %v2907_v2  ;;  %v1569_v43 = vld [vmem:[%s3796_s9 + $0x10] sm:$0xff] }
 0x1eb   : > { %2672 = vmatprep.subr.mxu0 %v2907_v2  ;;  %2694 = vmatpush3.msra.mxu1 %v2238_v56  ;;  %v2262_v44 = vld [vmem:[%s3796_s9 + $0xd0] sm:$0xff] }
 0x1ec   : > { %2673 = vmatpush3.msra.mxu0 %v2229_v46  ;;  %2695 = vmatprep.subr.mxu1 %v2907_v2  ;;  %v2261_v46 = vld [vmem:[%s3796_s9 + $0xc8] sm:$0xff] }
 0x1ed   : > { %2674 = vmatprep.subr.mxu0 %v2907_v2  ;;  %2696 = vmatpush3.msra.mxu1 %v2237_v58 }
 0x1ee   : > { %2675 = vmatpush3.msra.mxu0 %v2228_v47  ;;  %2697 = vmatprep.subr.mxu1 %v2907_v2  ;;  %v1567_v47 = vld [vmem:[%s3796_s9] sm:$0xff] }
 0x1ef   : > { %2676 = vmatprep.subr.mxu0 %v2907_v2  ;;  %2698 = vmatpush3.msra.mxu1 %v2236_v60  ;;  %v2259_v60 = vld [vmem:[%s3796_s9 + $0xb8] sm:$0xff] }
 0x1f0   : > { %2677 = vmatpush3.msra.mxu0 %v2227_v48  ;;  %2699 = vmatprep.subr.mxu1 %v2907_v2  ;;  %v2260_v48 = vld [vmem:[%s3796_s9 + $0xc0] sm:$0xff] }
 0x1f1   : > { %2678 = vmatprep.subr.mxu0 %v2907_v2  ;;  %2700 = vmatpush3.msra.mxu1 %v2235_v62 }
 0x1f2   : > { %2679 = vmatpush3.msra.mxu0 %v2226_v49  ;;  %2701 = vmatprep.subr.mxu1 %v2907_v2 }
 0x1f3   : > { %2680 = vmatprep.subr.mxu0 %v2907_v2  ;;  %2702 = vmatpush3.msra.mxu1 %v2234_v0  ;;  %v2257_v0 = vld [vmem:[%s3796_s9 + $0xa8] sm:$0xff] }
 0x1f4   : > { %2681 = vmatpush3.msra.mxu0 %v2225_v50  ;;  %2703 = vmatprep.subr.mxu1 %v2907_v2 }
 0x1f5   : > { %2682 = vmatprep.subr.mxu0 %v2907_v2  ;;  %2704 = vmatpush3.msra.mxu1 %v2233_v3  ;;  %v2255_v3 = vld [vmem:[%s3796_s9 + $0x98] sm:$0xff] }
 0x1f6   : > { %2683 = vmatpush3.msra.mxu0 %v2224_v51  ;;  %2708 = vmatprep.subr.mxu1 %v2907_v2 }
 0x1f7   : > { %2684 = vmatprep.subr.mxu0 %v2907_v2 }
 0x1f8   : > { %2685 = vmatpush3.msra.mxu0 %v2223_v52 }
 0x1f9   : > { %2686 = vmatprep.subr.mxu0 %v2907_v2 }
 0x1fa   : > { %2687 = vmatpush3.msra.mxu0 %v2222_v53 }
 0x1fb   : > { %2688 = vmatprep.subr.mxu0 %v2907_v2 }
 0x1fc   : > { %2689 = vmatpush3.msra.mxu0 %v2221_v54 }
 0x1fd   : > { %2691 = vmatmul.mubr.msk.f32.vlgmr.msra.gmra.mxu0 %vm475_vm2, %v1193_v55  ;;  %2723 = vmatprep.subr.mxu0 %v2907_v2  ;;  %v1534_v55 = vld [vmem:[%s469_s15] sm:$0xf] }
 0x1fe   : > { %2735 = vmatprep.mubr.msk.f32.mxu0 %vm2908_vm1, %v2907_v2  ;;  %2724 = vmatpush3.msra.mxu0 %v2246_v57 }
 0x1ff   : > { %2725 = vmatprep.subr.mxu0 %v2907_v2 }
 0x200   : > { %2726 = vmatpush3.msra.mxu0 %v2245_v59 }
 0x201   : > { %2727 = vmatprep.subr.mxu0 %v2907_v2 }
 0x202   : > { %2728 = vmatpush3.msra.mxu0 %v2244_v61 }
 0x203   : > { %2729 = vmatprep.subr.mxu0 %v2907_v2 }
 0x204   : > { %2730 = vmatpush3.msra.mxu0 %v2243_v63  ;;  %v2258_v63 = vld [vmem:[%s3796_s9 + $0xb0] sm:$0xff] }
 0x205   : > { %2731 = vmatprep.subr.mxu0 %v2907_v2 }
 0x206   : > { %2732 = vmatpush3.msra.mxu0 %v2242_v1  ;;  %v2256_v1 = vld [vmem:[%s3796_s9 + $0xa0] sm:$0xff] }
 0x207   : > { %2733 = vmatprep.subr.mxu0 %v2907_v2 }
 0x208   : > { %2734 = vmatpush3.msra.mxu0 %v2241_v4  ;;  %v2254_v4 = vld [vmem:[%s3796_s9 + $0x90] sm:$0xff] }
 0x209   : > { %2765 = vmatprep.subr.mxu0 %v2907_v2 }
 0x2a8   : > { %v1189_v6 = vpop.f32.mrf.mxu1 }
 0x2a9   : > { %v1116_v5 = vpop.f32.mrf.mxu0 }
 0x2aa   : > { %v2669_v8 = vpop.f32.mrf.mxu1  ;;  %v1190_v9 = vadd.f32 %v1189_v6, %v1116_v5  ;;  %v2253_v5 = vld [vmem:[%s3796_s9 + $0x88] sm:$0xff]  ;;  %v2252_v6 = vld [vmem:[%s3796_s9 + $0x80] sm:$0xff] }
 0x2ab   : > { %v2646_v7 = vpop.f32.mrf.mxu0  ;;  %v2250_v8 = vld [vmem:[%s3796_s9 + $0x70] sm:$0xff] }
 0x2ac   : > { %v2251_v7 = vld [vmem:[%s3796_s9 + $0x78] sm:$0xff] }
 0x2bd   : > { %v1274_v10 = vpop.f32.mrf.mxu0 }
 0x2be   : > { %v1278_v12 = vadd.f32 %v1274_v10, %v1190_v9  ;;  %v2249_v9 = vld [vmem:[%s3796_s9 + $0x68] sm:$0xff]  ;;  %v2248_v10 = vld [vmem:[%s3796_s9 + $0x60] sm:$0xff] }
 0x2bf   : > { %v2692_v13 = vpop.f32.mrf.mxu0 }
 0x2c0   : > { %v1286_v14 = vadd.f32 %v2232_v11, %v1278_v12  ;;  %v2285_v11 = vld [vmem:[%s3798_s11 + $0x98] sm:$0xff]  ;;  %v1927_v12 = vld [vmem:[%s3798_s11 + $0x48] sm:$0xff]  ;;  %v2284_v13 = vld [vmem:[%s3798_s11 + $0x90] sm:$0xff] }
 0x2c2   : > { %v1287_v15 = vmax.f32 %v1286_v14, 0.0  ;;  %v1926_v14 = vld [vmem:[%s3798_s11 + $0x40] sm:$0xff] }
 0x2c4   : > { %1289 = vst.msk [vmem:[#allocation4 + $0x1] sm:$0xf] %vm1288_vm13, %v1287_v15  ;;  %v2283_v15 = vld [vmem:[%s3798_s11 + $0x88] sm:$0xff] }
 0x2cb   : > { %v1297_v17 = vld [vmem:[#allocation4 + $0x1] sm:$0xf] }
 0x2cc   : > { %v1452_v18 = vld [vmem:[#allocation4 + $0x2] sm:$0xf]  ;;  %2706 = vmatmul.mubr.msk.f32.vlgmr.msra.gmra.mxu1 %vm1305_vm14, %v1297_v17 }
 0x2cd   : > { %2736 = vmatmul.mubr.msk.f32.vlgmr.msra.gmra.mxu0 %vm1305_vm14, %v1452_v18  ;;  %2709 = vmatpush3.msra.mxu1 %v1296_v16  ;;  %v1290_v24 = vld [vmem:[#allocation4] sm:$0xf]  ;;  %v1925_v16 = vld [vmem:[%s3798_s11 + $0x38] sm:$0xff]  ;;  %v1924_v18 = vld [vmem:[%s3798_s11 + $0x30] sm:$0xff] }
 0x2ce   : > { %2720 = vmatprep.mubr.msk.f32.mxu1 %vm2908_vm1, %v2907_v2  ;;  %2710 = vmatprep.subr.mxu1 %v2907_v2  ;;  %v2282_v17 = vld [vmem:[%s3798_s11 + $0x80] sm:$0xff] }
 0x2cf   : > { %2789 = vmatprep.mubr.msk.f32.mxu0 %vm2908_vm1, %v2907_v2  ;;  %2711 = vmatpush3.msra.mxu1 %v1295_v19  ;;  %v2281_v19 = vld [vmem:[%s3798_s11 + $0x78] sm:$0xff] }
 0x2d0   : > { %2712 = vmatprep.subr.mxu1 %v2907_v2  ;;  %2766 = vmatpush3.msra.mxu0 %v2271_v26  ;;  %v1920_v26 = vld [vmem:[%s3798_s11 + $0x10] sm:$0xff] }
 0x2d1   : > { %2713 = vmatpush3.msra.mxu1 %v1294_v20  ;;  %2767 = vmatprep.subr.mxu0 %v2907_v2  ;;  %v1923_v20 = vld [vmem:[%s3798_s11 + $0x28] sm:$0xff] }
 0x2d2   : > { %2714 = vmatprep.subr.mxu1 %v2907_v2  ;;  %2768 = vmatpush3.msra.mxu0 %v2270_v28  ;;  %v1919_v28 = vld [vmem:[%s3798_s11 + $0x8] sm:$0xff] }
 0x2d3   : > { %2715 = vmatpush3.msra.mxu1 %v1293_v21  ;;  %2769 = vmatprep.subr.mxu0 %v2907_v2  ;;  %v2280_v21 = vld [vmem:[%s3798_s11 + $0x70] sm:$0xff] }
 0x2d4   : > { %2716 = vmatprep.subr.mxu1 %v2907_v2  ;;  %2770 = vmatpush3.msra.mxu0 %v2269_v30  ;;  %v1918_v30 = vld [vmem:[%s3798_s11] sm:$0xff] }
 0x2d5   : > { %2717 = vmatpush3.msra.mxu1 %v1292_v22  ;;  %2771 = vmatprep.subr.mxu0 %v2907_v2  ;;  %v1922_v22 = vld [vmem:[%s3798_s11 + $0x20] sm:$0xff] }
 0x2d6   : > { %2718 = vmatprep.subr.mxu1 %v2907_v2  ;;  %2772 = vmatpush3.msra.mxu0 %v2268_v32 }
 0x2d7   : > { %2719 = vmatpush3.msra.mxu1 %v1291_v23  ;;  %2773 = vmatprep.subr.mxu0 %v2907_v2  ;;  %v2279_v23 = vld [vmem:[%s3798_s11 + $0x68] sm:$0xff] }
 0x2d8   : > { %2721 = vmatmul.mubr.msk.f32.vlgmr.msra.gmra.mxu1 %vm1305_vm14, %v1290_v24  ;;  %2738 = vmatprep.subr.mxu1 %v2907_v2  ;;  %v1921_v24 = vld [vmem:[%s3798_s11 + $0x18] sm:$0xff] }
 0x2d9   : > { %2762 = vmatprep.mubr.msk.f32.mxu1 %vm2908_vm1, %v2907_v2  ;;  %2739 = vmatpush3.msra.mxu1 %v1578_v25  ;;  %v2278_v25 = vld [vmem:[%s3798_s11 + $0x60] sm:$0xff] }
 0x2da   : > { %2740 = vmatprep.subr.mxu1 %v2907_v2  ;;  %2774 = vmatpush3.msra.mxu0 %v2267_v34 }
 0x2db   : > { %2741 = vmatpush3.msra.mxu1 %v1577_v27  ;;  %2775 = vmatprep.subr.mxu0 %v2907_v2  ;;  %v2277_v27 = vld [vmem:[%s3798_s11 + $0x58] sm:$0xff] }
 0x2dc   : > { %2742 = vmatprep.subr.mxu1 %v2907_v2  ;;  %2776 = vmatpush3.msra.mxu0 %v2266_v36 }
 0x2dd   : > { %2743 = vmatpush3.msra.mxu1 %v1576_v29  ;;  %2777 = vmatprep.subr.mxu0 %v2907_v2  ;;  %v2276_v29 = vld [vmem:[%s3798_s11 + $0x50] sm:$0xff] }
 0x2de   : > { %2744 = vmatprep.subr.mxu1 %v2907_v2  ;;  %2778 = vmatpush3.msra.mxu0 %v2265_v38 }
 0x2df   : > { %2745 = vmatpush3.msra.mxu1 %v1575_v31  ;;  %2779 = vmatprep.subr.mxu0 %v2907_v2 }
 0x2e0   : > { %2746 = vmatprep.subr.mxu1 %v2907_v2  ;;  %2780 = vmatpush3.msra.mxu0 %v2264_v40 }
 0x2e1   : > { %2747 = vmatpush3.msra.mxu1 %v1574_v33  ;;  %2781 = vmatprep.subr.mxu0 %v2907_v2  ;;  %v2274_v33 = vld [vmem:[%s3797_s10] ss:$0 sm:$0xff] }
 0x2e2   : > { %2748 = vmatprep.subr.mxu1 %v2907_v2  ;;  %2782 = vmatpush3.msra.mxu0 %v2263_v42 }
 0x2e3   : > { %2749 = vmatpush3.msra.mxu1 %v1573_v35  ;;  %2783 = vmatprep.subr.mxu0 %v2907_v2 }
 0x2e4   : > { %2750 = vmatprep.subr.mxu1 %v2907_v2  ;;  %2784 = vmatpush3.msra.mxu0 %v2262_v44 }
 0x2e5   : > { %2751 = vmatpush3.msra.mxu1 %v1572_v37  ;;  %2785 = vmatprep.subr.mxu0 %v2907_v2 }
 0x2e6   : > { %2752 = vmatprep.subr.mxu1 %v2907_v2  ;;  %2786 = vmatpush3.msra.mxu0 %v2261_v46  ;;  %v2296_v46 = vld [vmem:[%s3798_s11 + $0xe0] sm:$0xff] }
 0x2e7   : > { %2753 = vmatpush3.msra.mxu1 %v1571_v39  ;;  %2787 = vmatprep.subr.mxu0 %v2907_v2 }
 0x2e8   : > { %2754 = vmatprep.subr.mxu1 %v2907_v2  ;;  %2788 = vmatpush3.msra.mxu0 %v2260_v48  ;;  %v2294_v48 = vld [vmem:[%s3798_s11 + $0xd0] sm:$0xff] }
 0x2e9   : > { %2755 = vmatpush3.msra.mxu1 %v1570_v41  ;;  %2819 = vmatprep.subr.mxu0 %v2907_v2 }
 0x2ea   : > { %2756 = vmatprep.subr.mxu1 %v2907_v2 }
 0x2eb   : > { %2757 = vmatpush3.msra.mxu1 %v1569_v43  ;;  %v2297_v43 = vld [vmem:[%s3798_s11 + $0xe8] sm:$0xff] }
 0x2ec   : > { %2758 = vmatprep.subr.mxu1 %v2907_v2 }
 0x2ed   : > { %2759 = vmatpush3.msra.mxu1 %v1568_v45 }
 0x2ee   : > { %2760 = vmatprep.subr.mxu1 %v2907_v2 }
 0x2ef   : > { %2761 = vmatpush3.msra.mxu1 %v1567_v47  ;;  %v2295_v47 = vld [vmem:[%s3798_s11 + $0xd8] sm:$0xff] }
 0x2f0   : > { %2792 = vmatprep.subr.mxu1 %v2907_v2 }
 0x38c   : > { %v1375_v49 = vpop.f32.mrf.mxu1 }
 0x38d   : > { %v1529_v50 = vpop.f32.mrf.mxu0 }
 0x38e   : > { %v2707_v51 = vpop.f32.mrf.mxu1 }
 0x38f   : > { %v2737_v52 = vpop.f32.mrf.mxu0  ;;  %v2291_v51 = vld [vmem:[%s3798_s11 + $0xb8] sm:$0xff] }
 0x390   : > { %v2290_v52 = vld [vmem:[%s3798_s11 + $0xb0] sm:$0xff] }
 0x398   : > { %v1448_v53 = vpop.f32.mrf.mxu1 }
 0x399   : > { %v1449_v54 = vadd.f32 %v1448_v53, %v1375_v49  ;;  %v2293_v49 = vld [vmem:[%s3798_s11 + $0xc8] sm:$0xff] }
 0x39a   : > { %v2722_v56 = vpop.f32.mrf.mxu1  ;;  %v2289_v53 = vld [vmem:[%s3798_s11 + $0xa8] sm:$0xff] }
 0x39b   : > { %v1533_v57 = vadd.f32 %v1529_v50, %v1449_v54  ;;  %v2292_v50 = vld [vmem:[%s3798_s11 + $0xc0] sm:$0xff] }
 0x39c   : > { %v2288_v54 = vld [vmem:[%s3798_s11 + $0xa0] sm:$0xff] }
 0x39d   : > { %v1535_v58 = vadd.f32 %v1534_v55, %v1533_v57  ;;  %v2286_v55 = vld [vmem:[%s3799_s12] ss:$0 sm:$0xff] }
 0x39f   : > { %v1536_v59 = vmax.f32 %v1535_v58, 0.0 }
 0x3a1   : > { %1538 = vst.msk [vmem:[#allocation5 + $0x1] sm:$0xf] %vm1537_vm0, %v1536_v59 }
 0x3a8   : > { %v1566_v61 = vld [vmem:[#allocation5 + $0x2] sm:$0xf] }
 0x3a9   : > { %v1539_v62 = vld [vmem:[#allocation5 + $0x1] sm:$0xf]  ;;  %2763 = vmatmul.mubr.msk.f32.vlgmr.msra.gmra.mxu1 %vm1579_vm3, %v1566_v61 }
 0x3aa   : > { %2790 = vmatmul.mubr.msk.f32.vlgmr.msra.gmra.mxu0 %vm1579_vm3, %v1539_v62  ;;  %2793 = vmatpush3.msra.mxu1 %v2259_v60 }
 0x3ab   : > { %2816 = vmatprep.mubr.msk.f32.mxu1 %vm2908_vm1, %v2907_v2  ;;  %2794 = vmatprep.subr.mxu1 %v2907_v2 }
 0x3ac   : > { %2839 = vmatprep.mubr.msk.f32.mxu0 %vm2908_vm1, %v2907_v2  ;;  %2795 = vmatpush3.msra.mxu1 %v2258_v63 }
 0x3ad   : > { %2796 = vmatprep.subr.mxu1 %v2907_v2  ;;  %2820 = vmatpush3.msra.mxu0 %v2285_v11 }
 0x3ae   : > { %2797 = vmatpush3.msra.mxu1 %v2257_v0  ;;  %2821 = vmatprep.subr.mxu0 %v2907_v2 }
 0x3af   : > { %2798 = vmatprep.subr.mxu1 %v2907_v2  ;;  %2822 = vmatpush3.msra.mxu0 %v2284_v13 }
 0x3b0   : > { %2799 = vmatpush3.msra.mxu1 %v2256_v1  ;;  %2823 = vmatprep.subr.mxu0 %v2907_v2 }
 0x3b1   : > { %2800 = vmatprep.subr.mxu1 %v2907_v2  ;;  %2824 = vmatpush3.msra.mxu0 %v2283_v15 }
 0x3b2   : > { %2801 = vmatpush3.msra.mxu1 %v2255_v3  ;;  %2825 = vmatprep.subr.mxu0 %v2907_v2 }
 0x3b3   : > { %2802 = vmatprep.subr.mxu1 %v2907_v2  ;;  %2826 = vmatpush3.msra.mxu0 %v2282_v17 }
 0x3b4   : > { %2803 = vmatpush3.msra.mxu1 %v2254_v4  ;;  %2827 = vmatprep.subr.mxu0 %v2907_v2 }
 0x3b5   : > { %2804 = vmatprep.subr.mxu1 %v2907_v2  ;;  %2828 = vmatpush3.msra.mxu0 %v2281_v19 }
 0x3b6   : > { %2805 = vmatpush3.msra.mxu1 %v2253_v5  ;;  %2829 = vmatprep.subr.mxu0 %v2907_v2 }
 0x3b7   : > { %2806 = vmatprep.subr.mxu1 %v2907_v2  ;;  %2830 = vmatpush3.msra.mxu0 %v2280_v21 }
 0x3b8   : > { %2807 = vmatpush3.msra.mxu1 %v2252_v6  ;;  %2831 = vmatprep.subr.mxu0 %v2907_v2 }
 0x3b9   : > { %2808 = vmatprep.subr.mxu1 %v2907_v2  ;;  %2832 = vmatpush3.msra.mxu0 %v2279_v23 }
 0x3ba   : > { %2809 = vmatpush3.msra.mxu1 %v2251_v7  ;;  %2833 = vmatprep.subr.mxu0 %v2907_v2 }
 0x3bb   : > { %2810 = vmatprep.subr.mxu1 %v2907_v2  ;;  %2834 = vmatpush3.msra.mxu0 %v2278_v25 }
 0x3bc   : > { %2811 = vmatpush3.msra.mxu1 %v2250_v8  ;;  %2835 = vmatprep.subr.mxu0 %v2907_v2 }
 0x3bd   : > { %2812 = vmatprep.subr.mxu1 %v2907_v2  ;;  %2836 = vmatpush3.msra.mxu0 %v2277_v27 }
 0x3be   : > { %2813 = vmatpush3.msra.mxu1 %v2249_v9  ;;  %2837 = vmatprep.subr.mxu0 %v2907_v2 }
 0x3bf   : > { %2814 = vmatprep.subr.mxu1 %v2907_v2  ;;  %2838 = vmatpush3.msra.mxu0 %v2276_v29 }
 0x3c0   : > { %2815 = vmatpush3.msra.mxu1 %v2248_v10  ;;  %2865 = vmatprep.subr.mxu0 %v2907_v2 }
 0x3c1   : > { %2817 = vmatmul.mubr.msk.f32.vlgmr.msra.gmra.mxu1 %vm1579_vm3, %v1539_v62  ;;  %2842 = vmatprep.subr.mxu1 %v2907_v2 }
 0x3c2   : > { %2862 = vmatprep.mubr.msk.f32.mxu1 %vm2908_vm1, %v2907_v2  ;;  %2843 = vmatpush3.msra.mxu1 %v1927_v12 }
 0x3c3   : > { %2844 = vmatprep.subr.mxu1 %v2907_v2 }
 0x3c4   : > { %2845 = vmatpush3.msra.mxu1 %v1926_v14 }
 0x3c5   : > { %2846 = vmatprep.subr.mxu1 %v2907_v2 }
 0x3c6   : > { %2847 = vmatpush3.msra.mxu1 %v1925_v16 }
 0x3c7   : > { %2848 = vmatprep.subr.mxu1 %v2907_v2 }
 0x3c8   : > { %2849 = vmatpush3.msra.mxu1 %v1924_v18 }
 0x3c9   : > { %2850 = vmatprep.subr.mxu1 %v2907_v2 }
 0x3ca   : > { %2851 = vmatpush3.msra.mxu1 %v1923_v20 }
 0x3cb   : > { %2852 = vmatprep.subr.mxu1 %v2907_v2 }
 0x3cc   : > { %2853 = vmatpush3.msra.mxu1 %v1922_v22 }
 0x3cd   : > { %2854 = vmatprep.subr.mxu1 %v2907_v2 }
 0x3ce   : > { %2855 = vmatpush3.msra.mxu1 %v1921_v24 }
 0x3cf   : > { %2856 = vmatprep.subr.mxu1 %v2907_v2 }
 0x3d0   : > { %2857 = vmatpush3.msra.mxu1 %v1920_v26 }
 0x3d1   : > { %2858 = vmatprep.subr.mxu1 %v2907_v2 }
 0x3d2   : > { %2859 = vmatpush3.msra.mxu1 %v1919_v28 }
 0x3d3   : > { %2860 = vmatprep.subr.mxu1 %v2907_v2 }
 0x3d4   : > { %2861 = vmatpush3.msra.mxu1 %v1918_v30 }
 0x469   : > { %v1649_v31 = vpop.f32.mrf.mxu1 }
 0x46a   : > { %v1722_v32 = vpop.f32.mrf.mxu0 }
 0x46b   : > { %v1723_v34 = vadd.f32 %v1722_v32, %v1649_v31  ;;  %v2764_v35 = vpop.f32.mrf.mxu1 }
 0x46c   : > { %v2791_v36 = vpop.f32.mrf.mxu0 }
 0x46d   : > { %v1804_v37 = vadd.f32 %v2274_v33, %v1723_v34 }
 0x46f   : > { %v1805_v38 = vmax.f32 %v1804_v37, 0.0 }
 0x471   : > { %1807 = vst.msk [vmem:[#allocation6 + $0x2] sm:$0x1] %vm1008_vm4, %v1805_v38 }
 0x472   : > { %1809 = vst.msk [vmem:[#allocation6 + $0x3] sm:$0x2] %vm1010_vm5, %v1805_v38 }
 0x473   : > { %1811 = vst.msk [vmem:[#allocation6 + $0x4] sm:$0x4] %vm1012_vm6, %v1805_v38 }
 0x474   : > { %1813 = vst.msk [vmem:[#allocation6 + $0x5] sm:$0x8] %vm1014_vm7, %v1805_v38 }
 0x481   : > { %v1799_v39 = vpop.f32.mrf.mxu1 }
 0x482   : > { %v1800_v40 = vadd.f32 %v2274_v33, %v1799_v39 }
 0x483   : > { %v2818_v41 = vpop.f32.mrf.mxu1 }
 0x484   : > { %v1803_v42 = vmax.f32 %v1800_v40, 0.0 }
 0x486   : > { %1806 = vst.msk [vmem:[#allocation6 + $0x1] sm:$0x1] %vm1008_vm4, %v1803_v42 }
 0x487   : > { %1808 = vst.msk [vmem:[#allocation6 + $0x2] sm:$0x2] %vm1010_vm5, %v1803_v42 }
 0x488   : > { %1810 = vst.msk [vmem:[#allocation6 + $0x3] sm:$0x4] %vm1012_vm6, %v1803_v42 }
 0x489   : > { %1812 = vst.msk [vmem:[#allocation6 + $0x4] sm:$0x8] %vm1014_vm7, %v1803_v42 }
 0x490   : > { %v1814_v44 = vld [vmem:[#allocation6 + $0x1] sm:$0xff] }
 0x491   : > { %v1917_v45 = vld [vmem:[#allocation6 + $0x2] sm:$0xff]  ;;  %2840 = vmatmul.mubr.msk.f32.vlgmr.msra.gmra.mxu0 %vm475_vm2, %v1814_v44 }
 0x492   : > { %2863 = vmatmul.mubr.msk.f32.vlgmr.msra.gmra.mxu1 %vm475_vm2, %v1917_v45  ;;  %2866 = vmatpush3.msra.mxu0 %v2297_v43 }
 0x493   : > { %2885 = vmatprep.mubr.msk.f32.mxu0 %vm2908_vm1, %v2907_v2  ;;  %2867 = vmatprep.subr.mxu0 %v2907_v2  ;;  %vm2072_vm1 = vcmask 523264  }
 0x494   : > { %2868 = vmatpush3.msra.mxu0 %v2296_v46 }
 0x495   : > { %2869 = vmatprep.subr.mxu0 %v2907_v2 }
 0x496   : > { %2870 = vmatpush3.msra.mxu0 %v2295_v47 }
 0x497   : > { %2871 = vmatprep.subr.mxu0 %v2907_v2 }
 0x498   : > { %2872 = vmatpush3.msra.mxu0 %v2294_v48 }
 0x499   : > { %2873 = vmatprep.subr.mxu0 %v2907_v2 }
 0x49a   : > { %2874 = vmatpush3.msra.mxu0 %v2293_v49 }
 0x49b   : > { %2875 = vmatprep.subr.mxu0 %v2907_v2 }
 0x49c   : > { %2876 = vmatpush3.msra.mxu0 %v2292_v50 }
 0x49d   : > { %2877 = vmatprep.subr.mxu0 %v2907_v2 }
 0x49e   : > { %2878 = vmatpush3.msra.mxu0 %v2291_v51 }
 0x49f   : > { %2879 = vmatprep.subr.mxu0 %v2907_v2 }
 0x4a0   : > { %2880 = vmatpush3.msra.mxu0 %v2290_v52 }
 0x4a1   : > { %2881 = vmatprep.subr.mxu0 %v2907_v2 }
 0x4a2   : > { %2882 = vmatpush3.msra.mxu0 %v2289_v53 }
 0x4a3   : > { %2883 = vmatprep.subr.mxu0 %v2907_v2 }
 0x4a4   : > { %2884 = vmatpush3.msra.mxu0 %v2288_v54 }
 0x4a5   : > { %2886 = vmatmul.mubr.msk.f32.vlgmr.msra.gmra.mxu0 %vm475_vm2, %v1814_v44 }
 0x551   : > { %v1902_v56 = vpop.f32.mrf.mxu0 }
 0x552   : > { %v1997_v57 = vpop.f32.mrf.mxu1  ;;  %v1903_v58 = vadd.f32 %v2286_v55, %v1902_v56 }
 0x553   : > { %v2841_v59 = vpop.f32.mrf.mxu0 }
 0x554   : > { %v2864_v60 = vpop.f32.mrf.mxu1  ;;  %2073 = vst.msk [vmem:[%s474_s16] sm:$0xff] %vm2072_vm1, %v1903_v58 }
 0x565   : > { %v2067_v2 = vpop.f32.mrf.mxu0 }
 0x566   : > { %v2068_v61 = vadd.f32 %v2067_v2, %v1997_v57 }
 0x567   : > { %v2887_v62 = vpop.f32.mrf.mxu0 }
 0x568   : > { %v2071_v63 = vadd.f32 %v2286_v55, %v2068_v61 }
 0x56a   : > { %2074 = vst.msk [vmem:[%s474_s16 + $0x8] sm:$0xff] %vm2072_vm1, %v2071_v63 }
 0x56b PF: > { %s23_s25 = sadd.s32 1, %s2905_s25  }
 0x56c   : > { %p20_p4 = scmp.ge.s32.totalorder %s23_s25, 4  }
 0x56e   :  { %22 = sbr.rel (!%p20_p4) target bundleno = 1 (0x1), region = 120 }

</bundles_post_ra>
